<compile_context>
chip_gen: v6e
topology: v6e:2x2x1
jax: 0.10.0
libtpu: 0.0.40
codegen_flags: <defaults>
</compile_context>

<pallas_src>
import functools

import jax
import jax.numpy as jnp
from jax.experimental import pallas as pl
from jax.experimental.pallas import tpu as pltpu

N_EMBED = 50                      # n_embed
N_HEAD = 6                        # n_head
HEAD_SIZE = N_EMBED // N_HEAD     # 8
QKV_DIM = N_HEAD * HEAD_SIZE      # 48  (6*8 = 48 != 50, matches the PyTorch module)
LN_EPS = 1e-5                     # torch.nn.LayerNorm default


def _layernorm(h, g, b):
    mu = jnp.mean(h, axis=-1, keepdims=True)
    var = jnp.mean((h - mu) ** 2, axis=-1, keepdims=True)
    return (h - mu) * jax.lax.rsqrt(var + LN_EPS) * g + b


def block_kernel(x_ref,
                 ln1_g_ref, ln1_b_ref,
                 wqkv_ref, bqkv_ref,
                 wproj_ref, bproj_ref,
                 ln2_g_ref, ln2_b_ref,
                 w1_ref, b1_ref, w2_ref, b2_ref,
                 o_ref, *, batch, seq):
    B, T = batch, seq
    xf = x_ref[...]                                   # (B*T, C)
    R, C = xf.shape

    # ---- x = x + sa(la1(x)) ----
    h = _layernorm(xf, ln1_g_ref[...], ln1_b_ref[...])            # (R, C)

    # Fused Q/K/V projection: one MXU matmul + one bias add. The reference's C**-0.5
    # attention scale is already folded into the Q columns of wqkv/bqkv (param prep).
    qkv = jnp.dot(h, wqkv_ref[...],
                  preferred_element_type=jnp.float32) + bqkv_ref[...]   # (R, 3*QKV)
    qkv3 = qkv.reshape(B, T, 3 * QKV_DIM)

    # Per-head split. NOTE(perf review): a (B,T,H,hs) reshape + 'bthd,bshd->bhts'
    # einsum would be the fewest-relayout form, but Mosaic's dot_general supports a
    # single leading batch dim and the 4-D transpose that einsum would insert does not
    # lower reliably at these odd shapes, so the (unavoidable) head relayout is kept as
    # lane slices + one concat per tensor (known-good lowering). All heads still share
    # ONE causal mask, ONE softmax and ONE pair of batched einsums.
    def split_heads(base):                            # -> (H*B, T, hs)
        return jnp.concatenate(
            [qkv3[:, :, base + hd * HEAD_SIZE: base + (hd + 1) * HEAD_SIZE]
             for hd in range(N_HEAD)], axis=0)

    qh = split_heads(0)
    kh = split_heads(QKV_DIM)
    vh = split_heads(2 * QKV_DIM)                     # (H*B, T, hs)

    wei = jnp.einsum('ztd,zsd->zts', qh, kh,
                     preferred_element_type=jnp.float32)          # (H*B, T, T)

    row = jax.lax.broadcasted_iota(jnp.int32, (T, T), 0)
    col = jax.lax.broadcasted_iota(jnp.int32, (T, T), 1)
    causal = (row >= col)[None, :, :]
    wei = jnp.where(causal, wei, -1e30)               # finite sentinel: no NaN risk
    wei = wei - jnp.max(wei, axis=-1, keepdims=True)
    e = jnp.exp(wei)
    # Exact softmax denominator (previous approx reciprocal broke the parity check).
    attn = e / jnp.sum(e, axis=-1, keepdims=True)
    # TODO(synk): nn.Dropout(0.2) on attention weights (training mode) not implemented;
    # eval-mode identity used.

    heads = jnp.einsum('zts,zsd->ztd', attn, vh,
                       preferred_element_type=jnp.float32)        # (H*B, T, hs)

    # Re-concatenate heads along lanes (head-major, matching wproj's row order), then
    # ONE (R, QKV) @ (QKV, C) projection.
    cat = jnp.concatenate(
        [heads[hd * B:(hd + 1) * B] for hd in range(N_HEAD)], axis=-1)   # (B, T, QKV)
    cat = cat.reshape(R, QKV_DIM)

    sa = jnp.dot(cat, wproj_ref[...],
                 preferred_element_type=jnp.float32) + bproj_ref[...]
    x1 = xf + sa

    # ---- x = x + ffwd(la2(x)) ----
    h2 = _layernorm(x1, ln2_g_ref[...], ln2_b_ref[...])
    ff = jnp.dot(h2, w1_ref[...], preferred_element_type=jnp.float32) + b1_ref[...]
    ff = jnp.maximum(ff, 0.0)
    ff = jnp.dot(ff, w2_ref[...], preferred_element_type=jnp.float32) + b2_ref[...]
    # TODO(synk): final nn.Dropout(0.2) (training mode) not implemented; eval identity.
    o_ref[...] = x1 + ff


def prepare_block_params(p):
    """One-time parameter prep (hoisted out of the per-call path per the perf review):
    fuse the Q/K/V weights & biases and fold the reference's C**-0.5 attention scale
    into the Q columns so the kernel does one QKV matmul and no per-call concats."""
    scale = N_EMBED ** (-0.5)
    wqkv = jnp.concatenate([p["wq"] * scale, p["wk"], p["wv"]], axis=1)   # (C, 3*QKV)
    bqkv = jnp.concatenate([p["bq"] * scale, p["bk"], p["bv"]], axis=1)   # (1, 3*QKV)
    out = dict(p)
    out["wqkv"] = wqkv
    out["bqkv"] = bqkv
    return out


@jax.jit
def block_forward(x, prepared):
    B, T, C = x.shape
    assert C == N_EMBED

    args = [x.reshape(B * T, C),
            prepared["ln1_g"], prepared["ln1_b"],
            prepared["wqkv"], prepared["bqkv"],
            prepared["wproj"], prepared["bproj"],
            prepared["ln2_g"], prepared["ln2_b"],
            prepared["w1"], prepared["b1"], prepared["w2"], prepared["b2"]]

    def full_spec(shape):
        nd = len(shape)
        return pl.BlockSpec(shape, lambda i, _nd=nd: (0,) * _nd)

    in_specs = [full_spec(a.shape) for a in args]

    out = pl.pallas_call(
        functools.partial(block_kernel, batch=B, seq=T),
        out_shape=jax.ShapeDtypeStruct((B * T, C), jnp.float32),
        grid_spec=pltpu.PrefetchScalarGridSpec(
            num_scalar_prefetch=0,
            # Single grid step: entire working set (< 0.5 MiB) stays VMEM-resident on
            # v5e/v6e/v7x; avoids per-step overhead and duplicated weight DMA.
            grid=(1,),
            in_specs=in_specs,
            out_specs=full_spec((B * T, C)),
        ),
        # Flattened-x buffer is fully read before the single final write of o_ref,
        # so aliasing it with the output is safe.
        input_output_aliases={0: 0},
        compiler_params=pltpu.CompilerParams(
            dimension_semantics=("arbitrary",)),
    )(*args)
    return out.reshape(B, T, C)


def reference_forward(x, p, *, precision):
    """Plain-JAX mirror of the PyTorch Block forward (eval mode)."""
    B, T, C = x.shape
    h = _layernorm(x, p["ln1_g"][0], p["ln1_b"][0])
    q = jnp.dot(h, p["wq"], precision=precision) + p["bq"][0]
    k = jnp.dot(h, p["wk"], precision=precision) + p["bk"][0]
    v = jnp.dot(h, p["wv"], precision=precision) + p["bv"][0]
    scale = C ** (-0.5)
    mask = jnp.tril(jnp.ones((T, T), dtype=bool))
    outs = []
    for hd in range(N_HEAD):
        lo, hi = hd * HEAD_SIZE, (hd + 1) * HEAD_SIZE
        wei = jnp.einsum("btd,bsd->bts", q[..., lo:hi], k[..., lo:hi],
                         precision=precision) * scale
        wei = jnp.where(mask, wei, -jnp.inf)
        wei = jax.nn.softmax(wei, axis=-1)
        outs.append(jnp.einsum("bts,bsd->btd", wei, v[..., lo:hi],
                               precision=precision))
    sa = jnp.dot(jnp.concatenate(outs, axis=-1), p["wproj"],
                 precision=precision) + p["bproj"][0]
    x1 = x + sa
    h2 = _layernorm(x1, p["ln2_g"][0], p["ln2_b"][0])
    ff = jnp.maximum(jnp.dot(h2, p["w1"], precision=precision) + p["b1"][0], 0.0)
    ff = jnp.dot(ff, p["w2"], precision=precision) + p["b2"][0]
    return x1 + ff


if __name__ == "__main__":
    key = jax.random.PRNGKey(0)
    B, T = 2, 8
    ks = jax.random.split(key, 20)

    x = jax.random.normal(ks[0], (B, T, N_EMBED), jnp.float32)

    HIDDEN = 4 * N_EMBED
    QKV = QKV_DIM  # 48
    params = {
        "ln1_g": 1.0 + 0.1 * jax.random.normal(ks[1], (1, N_EMBED), jnp.float32),
        "ln1_b": 0.1 * jax.random.normal(ks[2], (1, N_EMBED), jnp.float32),
        "wq": 0.1 * jax.random.normal(ks[3], (N_EMBED, QKV), jnp.float32),
        "bq": 0.1 * jax.random.normal(ks[4], (1, QKV), jnp.float32),
        "wk": 0.1 * jax.random.normal(ks[5], (N_EMBED, QKV), jnp.float32),
        "bk": 0.1 * jax.random.normal(ks[6], (1, QKV), jnp.float32),
        "wv": 0.1 * jax.random.normal(ks[7], (N_EMBED, QKV), jnp.float32),
        "bv": 0.1 * jax.random.normal(ks[8], (1, QKV), jnp.float32),
        "wproj": 0.1 * jax.random.normal(ks[9], (QKV, N_EMBED), jnp.float32),
        "bproj": 0.1 * jax.random.normal(ks[10], (1, N_EMBED), jnp.float32),
        "ln2_g": 1.0 + 0.1 * jax.random.normal(ks[11], (1, N_EMBED), jnp.float32),
        "ln2_b": 0.1 * jax.random.normal(ks[12], (1, N_EMBED), jnp.float32),
        "w1": 0.1 * jax.random.normal(ks[13], (N_EMBED, HIDDEN), jnp.float32),
        "b1": 0.1 * jax.random.normal(ks[14], (1, HIDDEN), jnp.float32),
        "w2": 0.1 * jax.random.normal(ks[15], (HIDDEN, N_EMBED), jnp.float32),
        "b2": 0.1 * jax.random.normal(ks[16], (1, N_EMBED), jnp.float32),
    }

    prepared = prepare_block_params(params)
    out = jax.block_until_ready(block_forward(x, prepared))
    assert out.shape == (B, T, N_EMBED)

    # The kernel accumulates in f32; Mosaic runs f32 matmuls as multi-pass (near-f32)
    # MXU ops, whereas XLA's DEFAULT f32 matmul precision may be a single bf16 pass.
    # Compare against the reference at both precisions and require a tight match to
    # whichever one corresponds to the hardware path actually taken.
    ref_hi = reference_forward(x, params, precision=jax.lax.Precision.HIGHEST)
    ref_lo = reference_forward(x, params, precision=jax.lax.Precision.DEFAULT)
    err = min(float(jnp.max(jnp.abs(out - ref_hi))),
              float(jnp.max(jnp.abs(out - ref_lo))))
    assert err < 2e-3, f"mismatch vs plain-JAX reference (max abs err {err:.3e})"
    print("KERNEL_OK")
</pallas_src>

<mosaic_0001>
module attributes {stable_mosaic.version = 11 : i64} {
  func.func @block_kernel(%arg0: i32, %arg1: memref<16x50xf32, #tpu.memory_space<vmem>>, %arg2: memref<1x50xf32, #tpu.memory_space<vmem>>, %arg3: memref<1x50xf32, #tpu.memory_space<vmem>>, %arg4: memref<50x144xf32, #tpu.memory_space<vmem>>, %arg5: memref<1x144xf32, #tpu.memory_space<vmem>>, %arg6: memref<48x50xf32, #tpu.memory_space<vmem>>, %arg7: memref<1x50xf32, #tpu.memory_space<vmem>>, %arg8: memref<1x50xf32, #tpu.memory_space<vmem>>, %arg9: memref<1x50xf32, #tpu.memory_space<vmem>>, %arg10: memref<50x200xf32, #tpu.memory_space<vmem>>, %arg11: memref<1x200xf32, #tpu.memory_space<vmem>>, %arg12: memref<200x50xf32, #tpu.memory_space<vmem>>, %arg13: memref<1x50xf32, #tpu.memory_space<vmem>>, %arg14: memref<16x50xf32, #tpu.memory_space<vmem>>) attributes {dimension_semantics = [#tpu.dimension_semantics<arbitrary>], iteration_bounds = array<i64: 1>, scalar_prefetch = 0 : i64, scratch_operands = 0 : i64, tpu.core_type = #tpu.core_type<tc>, window_params = [{pipeline_mode = #tpu.pipeline_mode<synchronous>, transform_indices = @transform_0, window_bounds = array<i64: 16, 50>}, {pipeline_mode = #tpu.pipeline_mode<synchronous>, transform_indices = @transform_1, window_bounds = array<i64: 1, 50>}, {pipeline_mode = #tpu.pipeline_mode<synchronous>, transform_indices = @transform_2, window_bounds = array<i64: 1, 50>}, {pipeline_mode = #tpu.pipeline_mode<synchronous>, transform_indices = @transform_3, window_bounds = array<i64: 50, 144>}, {pipeline_mode = #tpu.pipeline_mode<synchronous>, transform_indices = @transform_4, window_bounds = array<i64: 1, 144>}, {pipeline_mode = #tpu.pipeline_mode<synchronous>, transform_indices = @transform_5, window_bounds = array<i64: 48, 50>}, {pipeline_mode = #tpu.pipeline_mode<synchronous>, transform_indices = @transform_6, window_bounds = array<i64: 1, 50>}, {pipeline_mode = #tpu.pipeline_mode<synchronous>, transform_indices = @transform_7, window_bounds = array<i64: 1, 50>}, {pipeline_mode = #tpu.pipeline_mode<synchronous>, transform_indices = @transform_8, window_bounds = array<i64: 1, 50>}, {pipeline_mode = #tpu.pipeline_mode<synchronous>, transform_indices = @transform_9, window_bounds = array<i64: 50, 200>}, {pipeline_mode = #tpu.pipeline_mode<synchronous>, transform_indices = @transform_10, window_bounds = array<i64: 1, 200>}, {pipeline_mode = #tpu.pipeline_mode<synchronous>, transform_indices = @transform_11, window_bounds = array<i64: 200, 50>}, {pipeline_mode = #tpu.pipeline_mode<synchronous>, transform_indices = @transform_12, window_bounds = array<i64: 1, 50>}, {pipeline_mode = #tpu.pipeline_mode<synchronous>, transform_indices = @transform_13, window_bounds = array<i64: 16, 50>}]} {
    %c0 = arith.constant 0 : index
    %c0_0 = arith.constant 0 : index
    %0 = vector.load %arg1[%c0, %c0_0] : memref<16x50xf32, #tpu.memory_space<vmem>>, vector<16x50xf32>
    %c0_1 = arith.constant 0 : index
    %c0_2 = arith.constant 0 : index
    %1 = vector.load %arg2[%c0_1, %c0_2] : memref<1x50xf32, #tpu.memory_space<vmem>>, vector<1x50xf32>
    %c0_3 = arith.constant 0 : index
    %c0_4 = arith.constant 0 : index
    %2 = vector.load %arg3[%c0_3, %c0_4] : memref<1x50xf32, #tpu.memory_space<vmem>>, vector<1x50xf32>
    %cst = arith.constant dense<0.000000e+00> : vector<16xf32>
    %3 = vector.multi_reduction <add>, %0, %cst [1] : vector<16x50xf32> to vector<16xf32>
    %4 = vector.shape_cast %3 : vector<16xf32> to vector<16x1xf32>
    %cst_5 = arith.constant 5.000000e+01 : f32
    %5 = vector.broadcast %cst_5 : f32 to vector<16x1xf32>
    %6 = arith.divf %4, %5 : vector<16x1xf32>
    %7 = vector.broadcast %6 : vector<16x1xf32> to vector<16x50xf32>
    %8 = arith.subf %0, %7 : vector<16x50xf32>
    %9 = arith.mulf %8, %8 : vector<16x50xf32>
    %cst_6 = arith.constant dense<0.000000e+00> : vector<16xf32>
    %10 = vector.multi_reduction <add>, %9, %cst_6 [1] : vector<16x50xf32> to vector<16xf32>
    %11 = vector.shape_cast %10 : vector<16xf32> to vector<16x1xf32>
    %cst_7 = arith.constant 5.000000e+01 : f32
    %12 = vector.broadcast %cst_7 : f32 to vector<16x1xf32>
    %13 = arith.divf %11, %12 : vector<16x1xf32>
    %14 = vector.broadcast %6 : vector<16x1xf32> to vector<16x50xf32>
    %15 = arith.subf %0, %14 : vector<16x50xf32>
    %cst_8 = arith.constant 9.99999974E-6 : f32
    %16 = vector.broadcast %cst_8 : f32 to vector<16x1xf32>
    %17 = arith.addf %13, %16 : vector<16x1xf32>
    %18 = math.rsqrt %17 : vector<16x1xf32>
    %19 = vector.broadcast %18 : vector<16x1xf32> to vector<16x50xf32>
    %20 = arith.mulf %15, %19 : vector<16x50xf32>
    %21 = vector.broadcast %1 : vector<1x50xf32> to vector<16x50xf32>
    %22 = arith.mulf %20, %21 : vector<16x50xf32>
    %23 = vector.broadcast %2 : vector<1x50xf32> to vector<16x50xf32>
    %24 = arith.addf %22, %23 : vector<16x50xf32>
    %c0_9 = arith.constant 0 : index
    %c0_10 = arith.constant 0 : index
    %25 = vector.load %arg4[%c0_9, %c0_10] : memref<50x144xf32, #tpu.memory_space<vmem>>, vector<50x144xf32>
    %cst_11 = arith.constant dense<0.000000e+00> : vector<16x144xf32>
    %26 = tpu.matmul %24, %25, %cst_11 {dimension_numbers = #tpu.dot_dimension_numbers<[1], [0], [0], [1], [0, 0, 1, 1], [], []>} : vector<16x50xf32>, vector<50x144xf32>, vector<16x144xf32> -> vector<16x144xf32>
    %c0_12 = arith.constant 0 : index
    %c0_13 = arith.constant 0 : index
    %27 = vector.load %arg5[%c0_12, %c0_13] : memref<1x144xf32, #tpu.memory_space<vmem>>, vector<1x144xf32>
    %28 = vector.broadcast %27 : vector<1x144xf32> to vector<16x144xf32>
    %29 = arith.addf %26, %28 : vector<16x144xf32>
    %30 = vector.shape_cast %29 : vector<16x144xf32> to vector<2x8x144xf32>
    %31 = vector.extract_strided_slice %30 {offsets = [0, 0, 0], sizes = [2, 8, 8], strides = [1, 1, 1]} : vector<2x8x144xf32> to vector<2x8x8xf32>
    %32 = vector.extract_strided_slice %30 {offsets = [0, 0, 8], sizes = [2, 8, 8], strides = [1, 1, 1]} : vector<2x8x144xf32> to vector<2x8x8xf32>
    %33 = vector.extract_strided_slice %30 {offsets = [0, 0, 16], sizes = [2, 8, 8], strides = [1, 1, 1]} : vector<2x8x144xf32> to vector<2x8x8xf32>
    %34 = vector.extract_strided_slice %30 {offsets = [0, 0, 24], sizes = [2, 8, 8], strides = [1, 1, 1]} : vector<2x8x144xf32> to vector<2x8x8xf32>
    %35 = vector.extract_strided_slice %30 {offsets = [0, 0, 32], sizes = [2, 8, 8], strides = [1, 1, 1]} : vector<2x8x144xf32> to vector<2x8x8xf32>
    %36 = vector.extract_strided_slice %30 {offsets = [0, 0, 40], sizes = [2, 8, 8], strides = [1, 1, 1]} : vector<2x8x144xf32> to vector<2x8x8xf32>
    %37 = tpu.concatenate %31, %32, %33, %34, %35, %36 in 0 : vector<2x8x8xf32>, vector<2x8x8xf32>, vector<2x8x8xf32>, vector<2x8x8xf32>, vector<2x8x8xf32>, vector<2x8x8xf32> -> vector<12x8x8xf32>
    %38 = vector.extract_strided_slice %30 {offsets = [0, 0, 48], sizes = [2, 8, 8], strides = [1, 1, 1]} : vector<2x8x144xf32> to vector<2x8x8xf32>
    %39 = vector.extract_strided_slice %30 {offsets = [0, 0, 56], sizes = [2, 8, 8], strides = [1, 1, 1]} : vector<2x8x144xf32> to vector<2x8x8xf32>
    %40 = vector.extract_strided_slice %30 {offsets = [0, 0, 64], sizes = [2, 8, 8], strides = [1, 1, 1]} : vector<2x8x144xf32> to vector<2x8x8xf32>
    %41 = vector.extract_strided_slice %30 {offsets = [0, 0, 72], sizes = [2, 8, 8], strides = [1, 1, 1]} : vector<2x8x144xf32> to vector<2x8x8xf32>
    %42 = vector.extract_strided_slice %30 {offsets = [0, 0, 80], sizes = [2, 8, 8], strides = [1, 1, 1]} : vector<2x8x144xf32> to vector<2x8x8xf32>
    %43 = vector.extract_strided_slice %30 {offsets = [0, 0, 88], sizes = [2, 8, 8], strides = [1, 1, 1]} : vector<2x8x144xf32> to vector<2x8x8xf32>
    %44 = tpu.concatenate %38, %39, %40, %41, %42, %43 in 0 : vector<2x8x8xf32>, vector<2x8x8xf32>, vector<2x8x8xf32>, vector<2x8x8xf32>, vector<2x8x8xf32>, vector<2x8x8xf32> -> vector<12x8x8xf32>
    %45 = vector.extract_strided_slice %30 {offsets = [0, 0, 96], sizes = [2, 8, 8], strides = [1, 1, 1]} : vector<2x8x144xf32> to vector<2x8x8xf32>
    %46 = vector.extract_strided_slice %30 {offsets = [0, 0, 104], sizes = [2, 8, 8], strides = [1, 1, 1]} : vector<2x8x144xf32> to vector<2x8x8xf32>
    %47 = vector.extract_strided_slice %30 {offsets = [0, 0, 112], sizes = [2, 8, 8], strides = [1, 1, 1]} : vector<2x8x144xf32> to vector<2x8x8xf32>
    %48 = vector.extract_strided_slice %30 {offsets = [0, 0, 120], sizes = [2, 8, 8], strides = [1, 1, 1]} : vector<2x8x144xf32> to vector<2x8x8xf32>
    %49 = vector.extract_strided_slice %30 {offsets = [0, 0, 128], sizes = [2, 8, 8], strides = [1, 1, 1]} : vector<2x8x144xf32> to vector<2x8x8xf32>
    %50 = vector.extract_strided_slice %30 {offsets = [0, 0, 136], sizes = [2, 8, 8], strides = [1, 1, 1]} : vector<2x8x144xf32> to vector<2x8x8xf32>
    %51 = tpu.concatenate %45, %46, %47, %48, %49, %50 in 0 : vector<2x8x8xf32>, vector<2x8x8xf32>, vector<2x8x8xf32>, vector<2x8x8xf32>, vector<2x8x8xf32>, vector<2x8x8xf32> -> vector<12x8x8xf32>
    "tpu.trace_start"() <{level = 10 : i32, message = "ztd,zsd->zts"}> : () -> ()
    %cst_14 = arith.constant dense<0.000000e+00> : vector<12x8x8xf32>
    %52 = tpu.matmul %37, %44, %cst_14 {dimension_numbers = #tpu.dot_dimension_numbers<[2], [2], [1], [1], [0, 0, 0, 1, 1, 1], [0], [0]>} : vector<12x8x8xf32>, vector<12x8x8xf32>, vector<12x8x8xf32> -> vector<12x8x8xf32>
    "tpu.trace_stop"() : () -> ()
    %53 = tpu.iota {dimensions = array<i32: 0>} : vector<8x8xi32>
    %54 = tpu.iota {dimensions = array<i32: 1>} : vector<8x8xi32>
    %55 = arith.cmpi sge, %53, %54 : vector<8x8xi32>
    %56 = vector.shape_cast %55 : vector<8x8xi1> to vector<1x8x8xi1>
    %cst_15 = arith.constant -1.000000e+30 : f32
    %57 = vector.shape_cast %56 : vector<1x8x8xi1> to vector<1x8x8xi1>
    %58 = vector.broadcast %57 : vector<1x8x8xi1> to vector<12x8x8xi1>
    %59 = vector.broadcast %cst_15 : f32 to vector<12x8x8xf32>
    %60 = arith.select %58, %52, %59 : vector<12x8x8xi1>, vector<12x8x8xf32>
    %cst_16 = arith.constant dense<0xFF800000> : vector<12x8xf32>
    %61 = vector.multi_reduction <maximumf>, %60, %cst_16 [2] : vector<12x8x8xf32> to vector<12x8xf32>
    %62 = vector.shape_cast %61 : vector<12x8xf32> to vector<12x8x1xf32>
    %63 = vector.broadcast %62 : vector<12x8x1xf32> to vector<12x8x8xf32>
    %64 = arith.subf %60, %63 : vector<12x8x8xf32>
    %65 = math.exp %64 : vector<12x8x8xf32>
    %cst_17 = arith.constant dense<0.000000e+00> : vector<12x8xf32>
    %66 = vector.multi_reduction <add>, %65, %cst_17 [2] : vector<12x8x8xf32> to vector<12x8xf32>
    %67 = vector.shape_cast %66 : vector<12x8xf32> to vector<12x8x1xf32>
    %68 = vector.broadcast %67 : vector<12x8x1xf32> to vector<12x8x8xf32>
    %69 = arith.divf %65, %68 : vector<12x8x8xf32>
    "tpu.trace_start"() <{level = 10 : i32, message = "zts,zsd->ztd"}> : () -> ()
    %cst_18 = arith.constant dense<0.000000e+00> : vector<12x8x8xf32>
    %70 = tpu.matmul %69, %51, %cst_18 {dimension_numbers = #tpu.dot_dimension_numbers<[2], [1], [1], [2], [0, 0, 0, 1, 1, 2], [0], [0]>} : vector<12x8x8xf32>, vector<12x8x8xf32>, vector<12x8x8xf32> -> vector<12x8x8xf32>
    "tpu.trace_stop"() : () -> ()
    %71 = vector.extract_strided_slice %70 {offsets = [0, 0, 0], sizes = [2, 8, 8], strides = [1, 1, 1]} : vector<12x8x8xf32> to vector<2x8x8xf32>
    %72 = vector.extract_strided_slice %70 {offsets = [2, 0, 0], sizes = [2, 8, 8], strides = [1, 1, 1]} : vector<12x8x8xf32> to vector<2x8x8xf32>
    %73 = vector.extract_strided_slice %70 {offsets = [4, 0, 0], sizes = [2, 8, 8], strides = [1, 1, 1]} : vector<12x8x8xf32> to vector<2x8x8xf32>
    %74 = vector.extract_strided_slice %70 {offsets = [6, 0, 0], sizes = [2, 8, 8], strides = [1, 1, 1]} : vector<12x8x8xf32> to vector<2x8x8xf32>
    %75 = vector.extract_strided_slice %70 {offsets = [8, 0, 0], sizes = [2, 8, 8], strides = [1, 1, 1]} : vector<12x8x8xf32> to vector<2x8x8xf32>
    %76 = vector.extract_strided_slice %70 {offsets = [10, 0, 0], sizes = [2, 8, 8], strides = [1, 1, 1]} : vector<12x8x8xf32> to vector<2x8x8xf32>
    %77 = tpu.concatenate %71, %72, %73, %74, %75, %76 in 2 : vector<2x8x8xf32>, vector<2x8x8xf32>, vector<2x8x8xf32>, vector<2x8x8xf32>, vector<2x8x8xf32>, vector<2x8x8xf32> -> vector<2x8x48xf32>
    %78 = vector.shape_cast %77 : vector<2x8x48xf32> to vector<16x48xf32>
    %c0_19 = arith.constant 0 : index
    %c0_20 = arith.constant 0 : index
    %79 = vector.load %arg6[%c0_19, %c0_20] : memref<48x50xf32, #tpu.memory_space<vmem>>, vector<48x50xf32>
    %cst_21 = arith.constant dense<0.000000e+00> : vector<16x50xf32>
    %80 = tpu.matmul %78, %79, %cst_21 {dimension_numbers = #tpu.dot_dimension_numbers<[1], [0], [0], [1], [0, 0, 1, 1], [], []>} : vector<16x48xf32>, vector<48x50xf32>, vector<16x50xf32> -> vector<16x50xf32>
    %c0_22 = arith.constant 0 : index
    %c0_23 = arith.constant 0 : index
    %81 = vector.load %arg7[%c0_22, %c0_23] : memref<1x50xf32, #tpu.memory_space<vmem>>, vector<1x50xf32>
    %82 = vector.broadcast %81 : vector<1x50xf32> to vector<16x50xf32>
    %83 = arith.addf %80, %82 : vector<16x50xf32>
    %84 = arith.addf %0, %83 : vector<16x50xf32>
    %c0_24 = arith.constant 0 : index
    %c0_25 = arith.constant 0 : index
    %85 = vector.load %arg8[%c0_24, %c0_25] : memref<1x50xf32, #tpu.memory_space<vmem>>, vector<1x50xf32>
    %c0_26 = arith.constant 0 : index
    %c0_27 = arith.constant 0 : index
    %86 = vector.load %arg9[%c0_26, %c0_27] : memref<1x50xf32, #tpu.memory_space<vmem>>, vector<1x50xf32>
    %cst_28 = arith.constant dense<0.000000e+00> : vector<16xf32>
    %87 = vector.multi_reduction <add>, %84, %cst_28 [1] : vector<16x50xf32> to vector<16xf32>
    %88 = vector.shape_cast %87 : vector<16xf32> to vector<16x1xf32>
    %cst_29 = arith.constant 5.000000e+01 : f32
    %89 = vector.broadcast %cst_29 : f32 to vector<16x1xf32>
    %90 = arith.divf %88, %89 : vector<16x1xf32>
    %91 = vector.broadcast %90 : vector<16x1xf32> to vector<16x50xf32>
    %92 = arith.subf %84, %91 : vector<16x50xf32>
    %93 = arith.mulf %92, %92 : vector<16x50xf32>
    %cst_30 = arith.constant dense<0.000000e+00> : vector<16xf32>
    %94 = vector.multi_reduction <add>, %93, %cst_30 [1] : vector<16x50xf32> to vector<16xf32>
    %95 = vector.shape_cast %94 : vector<16xf32> to vector<16x1xf32>
    %cst_31 = arith.constant 5.000000e+01 : f32
    %96 = vector.broadcast %cst_31 : f32 to vector<16x1xf32>
    %97 = arith.divf %95, %96 : vector<16x1xf32>
    %98 = vector.broadcast %90 : vector<16x1xf32> to vector<16x50xf32>
    %99 = arith.subf %84, %98 : vector<16x50xf32>
    %cst_32 = arith.constant 9.99999974E-6 : f32
    %100 = vector.broadcast %cst_32 : f32 to vector<16x1xf32>
    %101 = arith.addf %97, %100 : vector<16x1xf32>
    %102 = math.rsqrt %101 : vector<16x1xf32>
    %103 = vector.broadcast %102 : vector<16x1xf32> to vector<16x50xf32>
    %104 = arith.mulf %99, %103 : vector<16x50xf32>
    %105 = vector.broadcast %85 : vector<1x50xf32> to vector<16x50xf32>
    %106 = arith.mulf %104, %105 : vector<16x50xf32>
    %107 = vector.broadcast %86 : vector<1x50xf32> to vector<16x50xf32>
    %108 = arith.addf %106, %107 : vector<16x50xf32>
    %c0_33 = arith.constant 0 : index
    %c0_34 = arith.constant 0 : index
    %109 = vector.load %arg10[%c0_33, %c0_34] : memref<50x200xf32, #tpu.memory_space<vmem>>, vector<50x200xf32>
    %cst_35 = arith.constant dense<0.000000e+00> : vector<16x200xf32>
    %110 = tpu.matmul %108, %109, %cst_35 {dimension_numbers = #tpu.dot_dimension_numbers<[1], [0], [0], [1], [0, 0, 1, 1], [], []>} : vector<16x50xf32>, vector<50x200xf32>, vector<16x200xf32> -> vector<16x200xf32>
    %c0_36 = arith.constant 0 : index
    %c0_37 = arith.constant 0 : index
    %111 = vector.load %arg11[%c0_36, %c0_37] : memref<1x200xf32, #tpu.memory_space<vmem>>, vector<1x200xf32>
    %112 = vector.broadcast %111 : vector<1x200xf32> to vector<16x200xf32>
    %113 = arith.addf %110, %112 : vector<16x200xf32>
    %cst_38 = arith.constant 0.000000e+00 : f32
    %114 = vector.broadcast %cst_38 : f32 to vector<16x200xf32>
    %115 = arith.maximumf %113, %114 : vector<16x200xf32>
    %c0_39 = arith.constant 0 : index
    %c0_40 = arith.constant 0 : index
    %116 = vector.load %arg12[%c0_39, %c0_40] : memref<200x50xf32, #tpu.memory_space<vmem>>, vector<200x50xf32>
    %cst_41 = arith.constant dense<0.000000e+00> : vector<16x50xf32>
    %117 = tpu.matmul %115, %116, %cst_41 {dimension_numbers = #tpu.dot_dimension_numbers<[1], [0], [0], [1], [0, 0, 1, 1], [], []>} : vector<16x200xf32>, vector<200x50xf32>, vector<16x50xf32> -> vector<16x50xf32>
    %c0_42 = arith.constant 0 : index
    %c0_43 = arith.constant 0 : index
    %118 = vector.load %arg13[%c0_42, %c0_43] : memref<1x50xf32, #tpu.memory_space<vmem>>, vector<1x50xf32>
    %119 = vector.broadcast %118 : vector<1x50xf32> to vector<16x50xf32>
    %120 = arith.addf %117, %119 : vector<16x50xf32>
    %121 = arith.addf %84, %120 : vector<16x50xf32>
    %c0_44 = arith.constant 0 : index
    %c0_45 = arith.constant 0 : index
    %122 = vector.load %arg14[%c0_44, %c0_45] : memref<16x50xf32, #tpu.memory_space<vmem>>, vector<16x50xf32>
    tpu.vector_store %arg14[%c0_44, %c0_45], %121 {strides = array<i32>} : memref<16x50xf32, #tpu.memory_space<vmem>>, vector<16x50xf32>,
    return
  }
  func.func @transform_0(%arg0: i32) -> (i32, i32) {
    %c0_i32 = arith.constant 0 : i32
    %c0_i32_0 = arith.constant 0 : i32
    %c0_i32_1 = arith.constant 0 : i32
    return %c0_i32, %c0_i32_0 : i32, i32
  }
  func.func @transform_1(%arg0: i32) -> (i32, i32) {
    %c0_i32 = arith.constant 0 : i32
    %c0_i32_0 = arith.constant 0 : i32
    %c0_i32_1 = arith.constant 0 : i32
    return %c0_i32, %c0_i32_0 : i32, i32
  }
  func.func @transform_2(%arg0: i32) -> (i32, i32) {
    %c0_i32 = arith.constant 0 : i32
    %c0_i32_0 = arith.constant 0 : i32
    %c0_i32_1 = arith.constant 0 : i32
    return %c0_i32, %c0_i32_0 : i32, i32
  }
  func.func @transform_3(%arg0: i32) -> (i32, i32) {
    %c0_i32 = arith.constant 0 : i32
    %c0_i32_0 = arith.constant 0 : i32
    %c0_i32_1 = arith.constant 0 : i32
    return %c0_i32, %c0_i32_0 : i32, i32
  }
  func.func @transform_4(%arg0: i32) -> (i32, i32) {
    %c0_i32 = arith.constant 0 : i32
    %c0_i32_0 = arith.constant 0 : i32
    %c0_i32_1 = arith.constant 0 : i32
    return %c0_i32, %c0_i32_0 : i32, i32
  }
  func.func @transform_5(%arg0: i32) -> (i32, i32) {
    %c0_i32 = arith.constant 0 : i32
    %c0_i32_0 = arith.constant 0 : i32
    %c0_i32_1 = arith.constant 0 : i32
    return %c0_i32, %c0_i32_0 : i32, i32
  }
  func.func @transform_6(%arg0: i32) -> (i32, i32) {
    %c0_i32 = arith.constant 0 : i32
    %c0_i32_0 = arith.constant 0 : i32
    %c0_i32_1 = arith.constant 0 : i32
    return %c0_i32, %c0_i32_0 : i32, i32
  }
  func.func @transform_7(%arg0: i32) -> (i32, i32) {
    %c0_i32 = arith.constant 0 : i32
    %c0_i32_0 = arith.constant 0 : i32
    %c0_i32_1 = arith.constant 0 : i32
    return %c0_i32, %c0_i32_0 : i32, i32
  }
  func.func @transform_8(%arg0: i32) -> (i32, i32) {
    %c0_i32 = arith.constant 0 : i32
    %c0_i32_0 = arith.constant 0 : i32
    %c0_i32_1 = arith.constant 0 : i32
    return %c0_i32, %c0_i32_0 : i32, i32
  }
  func.func @transform_9(%arg0: i32) -> (i32, i32) {
    %c0_i32 = arith.constant 0 : i32
    %c0_i32_0 = arith.constant 0 : i32
    %c0_i32_1 = arith.constant 0 : i32
    return %c0_i32, %c0_i32_0 : i32, i32
  }
  func.func @transform_10(%arg0: i32) -> (i32, i32) {
    %c0_i32 = arith.constant 0 : i32
    %c0_i32_0 = arith.constant 0 : i32
    %c0_i32_1 = arith.constant 0 : i32
    return %c0_i32, %c0_i32_0 : i32, i32
  }
  func.func @transform_11(%arg0: i32) -> (i32, i32) {
    %c0_i32 = arith.constant 0 : i32
    %c0_i32_0 = arith.constant 0 : i32
    %c0_i32_1 = arith.constant 0 : i32
    return %c0_i32, %c0_i32_0 : i32, i32
  }
  func.func @transform_12(%arg0: i32) -> (i32, i32) {
    %c0_i32 = arith.constant 0 : i32
    %c0_i32_0 = arith.constant 0 : i32
    %c0_i32_1 = arith.constant 0 : i32
    return %c0_i32, %c0_i32_0 : i32, i32
  }
  func.func @transform_13(%arg0: i32) -> (i32, i32) {
    %c0_i32 = arith.constant 0 : i32
    %c0_i32_0 = arith.constant 0 : i32
    %c0_i32_1 = arith.constant 0 : i32
    return %c0_i32, %c0_i32_0 : i32, i32
  }
}

</mosaic_0001>

<bundles_post_ra>
// kernel: block_forward.1
= control target key start
LH: loop header
LB: loop body
LE: loop exit
PB: predicated region body
PF: predicated region fallthrough
CT: control target
= control target key end

     0   :  { %vm48_vm0 = vcmask 408576   ;;  %vm124_vm1 = vcmask 1041408   ;;  %v2968_v17 = vmov 0.0   ;;  %v108_v45 = vlaneseq  ;;  %s2969_s26 = smov 120   ;;  %s2970_s27 = smov 104   ;;  %s3720_s0 = inlined_call_operand.vmem [shape: f32[16,50], index: 0, kind: input, shape index: {}, may-alias: {0,13}]   ;;  %s3721_s3 = inlined_call_operand.vmem [shape: f32[50,144], index: 3, kind: input, shape index: {}]   ;;  %s3722_s1 = inlined_call_operand.vmem [shape: f32[1,50], index: 1, kind: input, shape index: {}]   ;;  %s3723_s2 = inlined_call_operand.vmem [shape: f32[1,50], index: 2, kind: input, shape index: {}]   ;;  %s3724_s4 = inlined_call_operand.vmem [shape: f32[1,144], index: 4, kind: input, shape index: {}]   ;;  %s3725_s5 = inlined_call_operand.vmem [shape: f32[48,50], index: 5, kind: input, shape index: {}]   ;;  %s3726_s6 = inlined_call_operand.vmem [shape: f32[1,50], index: 6, kind: input, shape index: {}]   ;;  %s3727_s9 = inlined_call_operand.vmem [shape: f32[50,200], index: 9, kind: input, shape index: {}]   ;;  %s3728_s11 = inlined_call_operand.vmem [shape: f32[200,50], index: 11, kind: input, shape index: {}]   ;;  %s3729_s7 = inlined_call_operand.vmem [shape: f32[1,50], index: 7, kind: input, shape index: {}]   ;;  %s3730_s8 = inlined_call_operand.vmem [shape: f32[1,50], index: 8, kind: input, shape index: {}]   ;;  %s3731_s10 = inlined_call_operand.vmem [shape: f32[1,200], index: 10, kind: input, shape index: {}]   ;;  %s3732_s12 = inlined_call_operand.vmem [shape: f32[1,50], index: 12, kind: input, shape index: {}]   ;;  %s3733_s13 = inlined_call_operand.vmem [shape: f32[16,50], index: 13, kind: output, shape index: {}, may-alias: {0,13}]  }
   0x1   :  { %v44_v0 = vld [vmem:[%s3720_s0] sm:$0xff]  ;;  %v45_v1 = vld [vmem:[%s3720_s0 + $0x8] sm:$0xff]  ;;  %v103_v16 = vld [vmem:[%s3721_s3 + $0x58] sm:$0xff]  ;;  %195 = vmatprep.mubr.f32.mxu0 %v2968_v17  ;;  %2777 = vmatprep.subr.mxu1 %v2968_v17  ;;  %vm2971_vm2 = vmmov 0   ;;  %s2973_s28 = smov 112   ;;  %s2974_s29 = smov 88  }
   0x2   :  { %v49_v2 = vsel %vm48_vm0, %v44_v0, 0.0  ;;  %v52_v3 = vsel %vm48_vm0, %v45_v1, 0.0  ;;  %v105_v14 = vld [vmem:[%s3721_s3 + $0x68] sm:$0x3]  ;;  %v104_v15 = vld [vmem:[%s3721_s3 + $0x60] sm:$0x3]  ;;  %2779 = vmatprep.mubr.msk.f32.mxu1 %vm2971_vm2, %v2968_v17 }
   0x3   :  { %50 = vadd.xlane.f32.xlu0 %v49_v2  ;;  %2654 = vmatprep.subr.msk.mxu0 %vm124_vm1, %v105_v14  ;;  %v102_v18 = vld [vmem:[%s3721_s3 + $0x50] sm:$0xff]  ;;  %v101_v19 = vld [vmem:[%s3721_s3 + $0x48] sm:$0xff]  ;;  %v100_v20 = vld [vmem:[%s3721_s3 + $0x40] sm:$0xff]  ;;  %v3118_v46 = vshrl.u32 %v108_v45, 7  ;;  %s2975_s30 = smov 80   ;;  %vm242_vm3 = vcmask 64512  }
   0x4   :  { %2655 = vmatpush1.msk.msra.mxu0 %vm124_vm1, %v104_v15  ;;  %v99_v21 = vld [vmem:[%s3721_s3 + $0x38] sm:$0xff]  ;;  %v98_v22 = vld [vmem:[%s3721_s3 + $0x30] sm:$0xff]  ;;  %v97_v23 = vld [vmem:[%s3721_s3 + $0x28] sm:$0xff]  ;;  %s2976_s14 = smov 32   ;;  %s2977_s15 = smov 8   ;;  %vm2258_vm5 = vcmask 130048  }
   0x5   :  { %151 = vmatprep.subr.mxu0 %v103_v16  ;;  %v96_v24 = vld [vmem:[%s3721_s3 + $0x20] sm:$0xff]  ;;  %v95_v25 = vld [vmem:[%s3721_s3 + $0x18] sm:$0xff]  ;;  %v94_v26 = vld [vmem:[%s3721_s3 + $0x10] sm:$0xff]  ;;  %v110_v47 = vsub.s32 0, %v3118_v46  ;;  %v114_v62 = vsub.s32 1, %v3118_v46  ;;  %s2978_s24 = smov 16  }
   0x6   :  { %152 = vmatpush1.msra.mxu0 %v102_v18  ;;  %v93_v27 = vld [vmem:[%s3721_s3 + $0x8] sm:$0xff]  ;;  %v92_v28 = vld [vmem:[%s3721_s3] sm:$0xff]  ;;  %vm2261_vm6 = vcmask 195584   ;;  %vm2264_vm7 = vcmask 261120   ;;  %vm2267_vm8 = vcmask 326656   ;;  %vm2283_vm9 = vcmask 392192  }
   0x7   :  { %53 = vadd.xlane.f32.xlu0 %v52_v3  ;;  %153 = vmatprep.subr.mxu0 %v101_v19  ;;  %v2652_v36 = vld [vmem:[%s3722_s1] ss:$0 sm:$0xff]  ;;  %vm2562_vm10 = vcmask 588800  }
   0x8   :  { %154 = vmatpush1.msra.mxu0 %v100_v20  ;;  %v2653_v38 = vld [vmem:[%s3723_s2] ss:$0 sm:$0xff] }
   0x9   :  { %155 = vmatprep.subr.mxu0 %v99_v21  ;;  %v106_v48 = vld [vmem:[%s3724_s4] sm:$0x3]  ;;  %s2972_s4 = smov 96  }
   0xa   :  { %156 = vmatpush1.msra.mxu0 %v98_v22  ;;  %v111_v49 = vrot.slane %v106_v48, %v110_v47 }
   0xb   :  { %157 = vmatprep.subr.mxu0 %v97_v23 }
   0xc   :  { %158 = vmatpush1.msra.mxu0 %v96_v24 }
   0xd   :  { %159 = vmatprep.subr.mxu0 %v95_v25  ;;  %v1156_v25 = vand.u32 127, %v108_v45 }
   0xe   :  { %160 = vmatpush1.msra.mxu0 %v94_v26 }
   0xf   :  { %161 = vmatprep.subr.mxu0 %v93_v27  ;;  %vm3267_vm4 = vcmp.ge.s32.totalorder %v3118_v46, %v1156_v25  ;;  %v2703_v46 = vld [vmem:[%s3732_s12] ss:$0 sm:$0xff] }
  0x10   :  { %162 = vmatpush1.msra.mxu0 %v92_v28 }
  0x11   :  { %2762 = vmatprep.subr.mxu0 %v2968_v17 }
  0x8c   :  { %v51_v4 = vpop.xlane.xlu0 %50 }
  0x8d   :  { %v56_v5 = vmul.f32 0.02, %v51_v4 }
  0x8f   :  { %v58_v6 = vsub.f32 %v44_v0, %v56_v5 }
  0x90   :  { %v54_v7 = vpop.xlane.xlu0 %53 }
  0x91   :  { %v57_v8 = vmul.f32 0.02, %v54_v7  ;;  %v60_v9 = vmul.f32 %v58_v6, %v58_v6 }
  0x93   :  { %v59_v10 = vsub.f32 %v45_v1, %v57_v8  ;;  %v62_v11 = vsel %vm48_vm0, %v60_v9, 0.0  ;;  %v115_v1 = vrot.slane %v106_v48, %v114_v62 }
  0x94   :  { %63 = vadd.xlane.f32.xlu1 %v62_v11 }
  0x95   :  { %v61_v12 = vmul.f32 %v59_v10, %v59_v10 }
  0x97   :  { %v65_v13 = vsel %vm48_vm0, %v61_v12, 0.0 }
  0x98   :  { %66 = vadd.xlane.f32.xlu1 %v65_v13 }
 0x11d   :  { %v64_v29 = vpop.xlane.xlu1 %63 }
 0x11e   :  { %v68_v30 = vmul.f32 0.02, %v64_v29 }
 0x120   :  { %v70_v31 = vadd.f32 1e-05, %v68_v30 }
 0x121   :  { %v67_v32 = vpop.xlane.xlu1 %66 }
 0x122   :  { %2910 = vrsqrt.f32 %v70_v31  ;;  %v69_v33 = vmul.f32 0.02, %v67_v32 }
 0x124   :  { %v71_v34 = vadd.f32 1e-05, %v69_v33 }
 0x126   :  { %2912 = vrsqrt.f32 %v71_v34 }
 0x12f   :  { %v2911_v35 = vpop.eup %2910 }
 0x130   :  { %v74_v37 = vmul.f32 %v2911_v35, %v58_v6 }
 0x132   :  { %v82_v39 = vmul.f32 %v2652_v36, %v74_v37 }
 0x133   :  { %v2913_v40 = vpop.eup %2912 }
 0x134   :  { %v90_v41 = vadd.f32 %v2653_v38, %v82_v39  ;;  %v75_v42 = vmul.f32 %v2913_v40, %v59_v10 }
 0x136   :  { %2656 = vmatmul.mubr.msk.f32.vlgmr.msra.gmra.mxu0 %vm48_vm0, %v90_v41  ;;  %v83_v43 = vmul.f32 %v2652_v36, %v75_v42 }
 0x137   :  { %201 = vmatprep.mubr.f32.mxu0 %v2968_v17 }
 0x138   :  { %v91_v44 = vadd.f32 %v2653_v38, %v83_v43 }
 0x13a   :  { %2657 = vmatmul.mubr.msk.f32.gmra.mxu0 %vm48_vm0, %v91_v44 }
 0x13b   :  { %2764 = vmatprep.mubr.msk.f32.mxu0 %vm2971_vm2, %v2968_v17 }
 0x1f6   :  { %v197_v50 = vpop.f32.mrf.mxu0 }
 0x1f7   :  { %v198_v51 = vadd.f32 %v197_v50, %v111_v49 }
 0x1f8   :  { %v199_v52 = vpop.f32.mrf.mxu0 }
 0x1f9   :  { %210 = vrot.lane.b32.xlu0 %v198_v51, %s2969_s26  ;;  %v200_v3 = vadd.f32 %v199_v52, %v115_v1 }
 0x1fa   :  { %v203_v53 = vpop.f32.mrf.mxu0 }
 0x1fb   :  { %v204_v54 = vadd.f32 %v203_v53, %v111_v49 }
 0x1fc   :  { %v205_v4 = vpop.f32.mrf.mxu0 }
 0x1fd   :  { %218 = vrot.lane.b32.xlu0 %v198_v51, %s2970_s27  ;;  %212 = vrot.lane.b32.xlu1 %v204_v54, %s2969_s26  ;;  %v206_v6 = vadd.f32 %v205_v4, %v115_v1  ;;  %s2979_s26 = smov 24  }
 0x201   :  { %222 = vrot.lane.b32.xlu0 %v198_v51, %s2972_s4  ;;  %214 = vrot.lane.b32.xlu1 %v198_v51, %s2973_s28 }
 0x205   :  { %226 = vrot.lane.b32.xlu0 %v198_v51, %s2974_s29  ;;  %216 = vrot.lane.b32.xlu1 %v204_v54, %s2973_s28 }
 0x209   :  { %240 = vrot.lane.b32.xlu0 %v198_v51, %s2975_s30  ;;  %220 = vrot.lane.b32.xlu1 %v204_v54, %s2970_s27 }
 0x20d   :  { %224 = vrot.lane.b32.xlu1 %v204_v54, %s2972_s4 }
 0x211   :  { %228 = vrot.lane.b32.xlu1 %v204_v54, %s2974_s29 }
 0x215   :  { %317 = vrot.lane.b32.xlu1 %v204_v54, %s2975_s30 }
 0x26b   :  { %v3136_v55 = vpop.permute.xlu0 %210 }
 0x26c   :  { %393 = vrot.lane.b32.xlu0 %v3136_v55, %s2975_s30 }
 0x26f   :  { %v3140_v56 = vpop.permute.xlu1 %212  ;;  %v3142_v57 = vpop.permute.xlu0 %218 }
 0x270   :  { %469 = vrot.lane.b32.xlu1 %v3140_v56, %s2975_s30 }
 0x273   :  { %v3146_v58 = vpop.permute.xlu1 %214  ;;  %v3148_v59 = vpop.permute.xlu0 %222 }
 0x274   :  { %545 = vrot.lane.b32.xlu0 %v3146_v58, %s2975_s30 }
 0x277   :  { %v3152_v60 = vpop.permute.xlu1 %216  ;;  %v3154_v61 = vpop.permute.xlu0 %226 }
 0x278   :  { %621 = vrot.lane.b32.xlu1 %v3152_v60, %s2975_s30  ;;  %697 = vrot.lane.b32.xlu0 %v3142_v57, %s2975_s30 }
 0x27b   :  { %v3161_v63 = vpop.permute.xlu1 %220  ;;  %v241_v0 = vpop.permute.xlu0 %240 }
 0x27c   :  { %773 = vrot.lane.b32.xlu1 %v3161_v63, %s2975_s30  ;;  %849 = vrot.lane.b32.xlu0 %v3148_v59, %s2975_s30 }
 0x27d   :  { %2763 = vmatpush3.xpose.msk.msra.mxu0 %vm242_vm3, %v241_v0 }
 0x27e   :  { %2767 = vmatprep.subr.mxu0 %v2968_v17 }
 0x27f   :  { %v3171_v2 = vpop.permute.xlu1 %224 }
 0x280   :  { %2765 = vmatmul.mubr.msk.f32.vlgmr.msra.gmra.mxu0 %vm242_vm3, %v198_v51  ;;  %925 = vrot.lane.b32.xlu1 %v3171_v2, %s2975_s30 }
 0x281   :  { %1001 = vrot.lane.b32.xlu0 %v3154_v61, %s2975_s30  ;;  %2769 = vmatprep.mubr.msk.f32.mxu0 %vm2971_vm2, %v2968_v17 }
 0x283   :  { %v3180_v5 = vpop.permute.xlu1 %228 }
 0x284   :  { %1077 = vrot.lane.b32.xlu1 %v3180_v5, %s2975_s30 }
 0x285   :  { %232 = vrot.lane.b32.xlu0 %v200_v3, %s2972_s4 }
 0x287   :  { %v318_v7 = vpop.permute.xlu1 %317 }
 0x288   :  { %234 = vrot.lane.b32.xlu1 %v206_v6, %s2972_s4  ;;  %2768 = vmatpush3.xpose.msk.msra.mxu0 %vm242_vm3, %v318_v7 }
 0x289   :  { %1304 = vrot.lane.b32.xlu0 %v198_v51, %s2976_s14  ;;  %2772 = vmatprep.subr.mxu0 %v2968_v17 }
 0x28b   :  { %2770 = vmatmul.mubr.msk.f32.vlgmr.msra.gmra.mxu0 %vm242_vm3, %v204_v54 }
 0x28c   :  { %236 = vrot.lane.b32.xlu1 %v200_v3, %s2974_s29  ;;  %2774 = vmatprep.mubr.msk.f32.mxu0 %vm2971_vm2, %v2968_v17 }
 0x290   :  { %238 = vrot.lane.b32.xlu1 %v206_v6, %s2974_s29 }
 0x294   :  { %1380 = vrot.lane.b32.xlu1 %v204_v54, %s2976_s14 }
 0x2de   :  { %v394_v8 = vpop.permute.xlu0 %393 }
 0x2df   :  { %2773 = vmatpush3.xpose.msk.msra.mxu0 %vm242_vm3, %v394_v8 }
 0x2e0   :  { %2787 = vmatprep.subr.mxu0 %v2968_v17 }
 0x2e2   :  { %v470_v9 = vpop.permute.xlu1 %469  ;;  %2775 = vmatmul.mubr.msk.f32.vlgmr.msra.gmra.mxu0 %vm242_vm3, %v3136_v55 }
 0x2e3   :  { %2778 = vmatpush3.xpose.msk.msra.mxu1 %vm242_vm3, %v470_v9  ;;  %2789 = vmatprep.mubr.msk.f32.mxu0 %vm2971_vm2, %v2968_v17 }
 0x2e4   :  { %2782 = vmatprep.subr.mxu1 %v2968_v17 }
 0x2e6   :  { %2780 = vmatmul.mubr.msk.f32.vlgmr.msra.gmra.mxu1 %vm242_vm3, %v3140_v56  ;;  %v546_v10 = vpop.permute.xlu0 %545 }
 0x2e7   :  { %2783 = vmatpush3.xpose.msk.msra.mxu1 %vm242_vm3, %v546_v10  ;;  %2784 = vmatprep.mubr.msk.f32.mxu1 %vm2971_vm2, %v2968_v17 }
 0x2e8   :  { %2792 = vmatprep.subr.mxu1 %v2968_v17 }
 0x2ea   :  { %v622_v11 = vpop.permute.xlu1 %621  ;;  %2785 = vmatmul.mubr.msk.f32.vlgmr.msra.gmra.mxu1 %vm242_vm3, %v3146_v58  ;;  %v698_v12 = vpop.permute.xlu0 %697 }
 0x2eb   :  { %2788 = vmatpush3.xpose.msk.msra.mxu0 %vm242_vm3, %v622_v11  ;;  %2793 = vmatpush3.xpose.msk.msra.mxu1 %vm242_vm3, %v698_v12 }
 0x2ec   :  { %2794 = vmatprep.mubr.msk.f32.mxu1 %vm2971_vm2, %v2968_v17  ;;  %2797 = vmatprep.subr.mxu0 %v2968_v17 }
 0x2ed   :  { %2802 = vmatprep.subr.mxu1 %v2968_v17 }
 0x2ee   :  { %v774_v13 = vpop.permute.xlu1 %773  ;;  %2790 = vmatmul.mubr.msk.f32.vlgmr.msra.gmra.mxu0 %vm242_vm3, %v3152_v60  ;;  %2795 = vmatmul.mubr.msk.f32.vlgmr.msra.gmra.mxu1 %vm242_vm3, %v3142_v57  ;;  %v850_v14 = vpop.permute.xlu0 %849 }
 0x2ef   :  { %2798 = vmatpush3.xpose.msk.msra.mxu0 %vm242_vm3, %v774_v13  ;;  %2803 = vmatpush3.xpose.msk.msra.mxu1 %vm242_vm3, %v850_v14 }
 0x2f0   :  { %2799 = vmatprep.mubr.msk.f32.mxu0 %vm2971_vm2, %v2968_v17  ;;  %2804 = vmatprep.mubr.msk.f32.mxu1 %vm2971_vm2, %v2968_v17 }
 0x2f1   :  { %2807 = vmatprep.subr.mxu0 %v2968_v17  ;;  %2812 = vmatprep.subr.mxu1 %v2968_v17 }
 0x2f2   :  { %v926_v15 = vpop.permute.xlu1 %925  ;;  %2800 = vmatmul.mubr.msk.f32.vlgmr.msra.gmra.mxu0 %vm242_vm3, %v3161_v63  ;;  %2805 = vmatmul.mubr.msk.f32.vlgmr.msra.gmra.mxu1 %vm242_vm3, %v3148_v59 }
 0x2f3   :  { %v1002_v16 = vpop.permute.xlu0 %1001  ;;  %2808 = vmatpush3.xpose.msk.msra.mxu0 %vm242_vm3, %v926_v15  ;;  %2809 = vmatprep.mubr.msk.f32.mxu0 %vm2971_vm2, %v2968_v17 }
 0x2f4   :  { %2813 = vmatpush3.xpose.msk.msra.mxu1 %vm242_vm3, %v1002_v16  ;;  %2814 = vmatprep.mubr.msk.f32.mxu1 %vm2971_vm2, %v2968_v17 }
 0x2f5   :  { %2817 = vmatprep.subr.mxu0 %v2968_v17  ;;  %2822 = vmatprep.subr.mxu1 %v2968_v17 }
 0x2f6   :  { %v1078_v18 = vpop.permute.xlu1 %1077  ;;  %2810 = vmatmul.mubr.msk.f32.vlgmr.msra.gmra.mxu0 %vm242_vm3, %v3171_v2 }
 0x2f7   :  { %2815 = vmatmul.mubr.msk.f32.vlgmr.msra.gmra.mxu1 %vm242_vm3, %v3154_v61  ;;  %v3245_v19 = vpop.permute.xlu0 %232  ;;  %2818 = vmatpush3.xpose.msk.msra.mxu0 %vm242_vm3, %v1078_v18 }
 0x2f8   :  { %2819 = vmatprep.mubr.msk.f32.mxu0 %vm2971_vm2, %v2968_v17  ;;  %2827 = vmatprep.subr.mxu0 %v2968_v17 }
 0x2f9   :  { %2824 = vmatprep.mubr.msk.f32.mxu1 %vm2971_vm2, %v2968_v17 }
 0x2fa   :  { %v3253_v20 = vpop.permute.xlu1 %234  ;;  %2820 = vmatmul.mubr.msk.f32.vlgmr.msra.gmra.mxu0 %vm242_vm3, %v3180_v5 }
 0x2fb   :  { %v1305_v21 = vpop.permute.xlu0 %1304  ;;  %2829 = vmatprep.mubr.msk.f32.mxu0 %vm2971_vm2, %v2968_v17 }
 0x2fc   :  { %2823 = vmatpush3.msra.mxu1 %v1305_v21 }
 0x2fd   :  { %2832 = vmatprep.subr.mxu1 %v2968_v17 }
 0x2fe   :  { %v3260_v22 = vpop.permute.xlu1 %236 }
 0x302   :  { %v3262_v23 = vpop.permute.xlu1 %238 }
 0x306   :  { %v1381_v24 = vpop.permute.xlu1 %1380 }
 0x307   :  { %2828 = vmatpush3.msra.mxu0 %v1381_v24 }
 0x308   :  { %2837 = vmatprep.subr.mxu0 %v2968_v17 }
 0x340   :  { %v313_v27 = vpop.f32.mrf.mxu0 }
 0x341   :  { %v3273_v28 = vsel %vm3267_vm4, %v313_v27, -1e+30 }
 0x342   :  { %v2766_v29 = vpop.f32.mrf.mxu0  ;;  %v1172_v30 = vsel %vm242_vm3, %v3273_v28, -inf }
 0x343   :  { %1173 = vmax.xlane.f32.xlu0 %v1172_v30 }
 0x34b   :  { %v389_v31 = vpop.f32.mrf.mxu0 }
 0x34c   :  { %v3279_v32 = vsel %vm3267_vm4, %v389_v31, -1e+30 }
 0x34d   :  { %v2771_v33 = vpop.f32.mrf.mxu0  ;;  %v1175_v34 = vsel %vm242_vm3, %v3279_v32, -inf }
 0x34e   :  { %1176 = vmax.xlane.f32.xlu1 %v1175_v34 }
 0x35f   :  { %1456 = vrot.lane.b32.xlu1 %v3136_v55, %s2976_s14 }
 0x3a2   :  { %v465_v35 = vpop.f32.mrf.mxu0 }
 0x3a3   :  { %v3287_v36 = vsel %vm3267_vm4, %v465_v35, -1e+30 }
 0x3a4   :  { %v2776_v37 = vpop.f32.mrf.mxu0  ;;  %v1178_v38 = vsel %vm242_vm3, %v3287_v36, -inf }
 0x3a5   :  { %1179 = vmax.xlane.f32.xlu0 %v1178_v38 }
 0x3a6   :  { %v541_v39 = vpop.f32.mrf.mxu1 }
 0x3a7   :  { %v3293_v40 = vsel %vm3267_vm4, %v541_v39, -1e+30 }
 0x3a8   :  { %v2781_v41 = vpop.f32.mrf.mxu1  ;;  %v1181_v42 = vsel %vm242_vm3, %v3293_v40, -inf }
 0x3a9   :  { %1182 = vmax.xlane.f32.xlu0 %v1181_v42 }
 0x3aa   :  { %v617_v43 = vpop.f32.mrf.mxu1 }
 0x3ab   :  { %v3299_v44 = vsel %vm3267_vm4, %v617_v43, -1e+30 }
 0x3ac   :  { %v2786_v45 = vpop.f32.mrf.mxu1  ;;  %v1184_v48 = vsel %vm242_vm3, %v3299_v44, -inf }
 0x3ad   :  { %1185 = vmax.xlane.f32.xlu0 %v1184_v48 }
 0x3ae   :  { %v693_v49 = vpop.f32.mrf.mxu0  ;;  %v769_v50 = vpop.f32.mrf.mxu1 }
 0x3af   :  { %v3305_v51 = vsel %vm3267_vm4, %v693_v49, -1e+30  ;;  %v3309_v52 = vsel %vm3267_vm4, %v769_v50, -1e+30 }
 0x3b0   :  { %v2791_v53 = vpop.f32.mrf.mxu0  ;;  %v2796_v54 = vpop.f32.mrf.mxu1  ;;  %v1187_v55 = vsel %vm242_vm3, %v3305_v51, -inf  ;;  %v1190_v59 = vsel %vm242_vm3, %v3309_v52, -inf }
 0x3b1   :  { %1188 = vmax.xlane.f32.xlu1 %v1187_v55  ;;  %1191 = vmax.xlane.f32.xlu0 %v1190_v59 }
 0x3b2   :  { %v845_v61 = vpop.f32.mrf.mxu0  ;;  %v921_v0 = vpop.f32.mrf.mxu1 }
 0x3b3   :  { %v3317_v1 = vsel %vm3267_vm4, %v845_v61, -1e+30  ;;  %v3321_v2 = vsel %vm3267_vm4, %v921_v0, -1e+30 }
 0x3b4   :  { %v2801_v3 = vpop.f32.mrf.mxu0  ;;  %v2806_v4 = vpop.f32.mrf.mxu1  ;;  %v1193_v5 = vsel %vm242_vm3, %v3317_v1, -inf  ;;  %v1196_v6 = vsel %vm242_vm3, %v3321_v2, -inf }
 0x3b5   :  { %1194 = vmax.xlane.f32.xlu1 %v1193_v5  ;;  %1197 = vmax.xlane.f32.xlu0 %v1196_v6 }
 0x3b6   :  { %v997_v7 = vpop.f32.mrf.mxu0 }
 0x3b7   :  { %v3329_v8 = vsel %vm3267_vm4, %v997_v7, -1e+30  ;;  %v1073_v9 = vpop.f32.mrf.mxu1 }
 0x3b8   :  { %v3333_v10 = vsel %vm3267_vm4, %v1073_v9, -1e+30  ;;  %v2811_v11 = vpop.f32.mrf.mxu0  ;;  %v1199_v12 = vsel %vm242_vm3, %v3329_v8, -inf }
 0x3b9   :  { %v2816_v13 = vpop.f32.mrf.mxu1  ;;  %1200 = vmax.xlane.f32.xlu1 %v1199_v12  ;;  %v1202_v14 = vsel %vm242_vm3, %v3333_v10, -inf }
 0x3ba   :  { %1203 = vmax.xlane.f32.xlu0 %v1202_v14  ;;  %v1149_v15 = vpop.f32.mrf.mxu0 }
 0x3bb   :  { %v3341_v16 = vsel %vm3267_vm4, %v1149_v15, -1e+30 }
 0x3bc   :  { %v2821_v18 = vpop.f32.mrf.mxu0  ;;  %v1205_v21 = vsel %vm242_vm3, %v3341_v16, -inf }
 0x3bd   :  { %1206 = vmax.xlane.f32.xlu1 %v1205_v21 }
 0x3cc   :  { %v1174_v24 = vpop.xlane.xlu0 %1173 }
 0x3ce   :  { %1532 = vrot.lane.b32.xlu1 %v3140_v56, %s2976_s14  ;;  %v1208_v56 = vsub.f32 %v3273_v28, %v1174_v24 }
 0x3d0   :  { %1608 = vrot.lane.b32.xlu0 %v3146_v58, %s2976_s14  ;;  %v1220_v25 = vmul.f32 1.442695, %v1208_v56 }
 0x3d2   :  { %1684 = vrot.lane.b32.xlu1 %v3152_v60, %s2976_s14  ;;  %2914 = vpow2.f32 %v1220_v25 }
 0x3d4   :  { %1760 = vrot.lane.b32.xlu0 %v3142_v57, %s2976_s14 }
 0x3d6   :  { %1836 = vrot.lane.b32.xlu1 %v3161_v63, %s2976_s14 }
 0x3d7   :  { %v1177_v58 = vpop.xlane.xlu1 %1176 }
 0x3d8   :  { %1912 = vrot.lane.b32.xlu0 %v3245_v19, %s2976_s14  ;;  %v1209_v26 = vsub.f32 %v3279_v32, %v1177_v58 }
 0x3da   :  { %1988 = vrot.lane.b32.xlu1 %v3253_v20, %s2976_s14  ;;  %v1222_v60 = vmul.f32 1.442695, %v1209_v26 }
 0x3db   :  { %v3371_v33 = vpop.permute.xlu1 %1456 }
 0x3dc   :  { %2916 = vpow2.f32 %v1222_v60 }
 0x3df   :  { %v3361_v57 = vpop.eup %2914 }
 0x3e0   :  { %v1244_v63 = vsel %vm242_vm3, %v3361_v57, 0.0 }
 0x3e9   :  { %v3365_v19 = vpop.eup %2916 }
 0x3ea   :  { %v1247_v20 = vsel %vm242_vm3, %v3365_v19, 0.0 }
 0x3f7   :  { %1245 = vadd.xlane.f32.xlu0 %v1244_v63 }
 0x3fe   :  { %1248 = vadd.xlane.f32.xlu1 %v1247_v20 }
 0x42e   :  { %v1180_v27 = vpop.xlane.xlu0 %1179 }
 0x42f   :  { %v1210_v28 = vsub.f32 %v3287_v36, %v1180_v27 }
 0x431   :  { %v1224_v29 = vmul.f32 1.442695, %v1210_v28 }
 0x432   :  { %v1183_v30 = vpop.xlane.xlu0 %1182 }
 0x433   :  { %2918 = vpow2.f32 %v1224_v29  ;;  %v1211_v31 = vsub.f32 %v3293_v40, %v1183_v30 }
 0x435   :  { %v1226_v32 = vmul.f32 1.442695, %v1211_v31 }
 0x436   :  { %v1186_v34 = vpop.xlane.xlu0 %1185 }
 0x437   :  { %2920 = vpow2.f32 %v1226_v32  ;;  %v1212_v35 = vsub.f32 %v3299_v44, %v1186_v34 }
 0x439   :  { %v1228_v37 = vmul.f32 1.442695, %v1212_v35 }
 0x43a   :  { %v1189_v38 = vpop.xlane.xlu1 %1188  ;;  %v1192_v39 = vpop.xlane.xlu0 %1191 }
 0x43b   :  { %2922 = vpow2.f32 %v1228_v37  ;;  %v1213_v41 = vsub.f32 %v3305_v51, %v1189_v38  ;;  %v1214_v36 = vsub.f32 %v3309_v52, %v1192_v39 }
 0x43d   :  { %v1230_v42 = vmul.f32 1.442695, %v1213_v41  ;;  %v1232_v43 = vmul.f32 1.442695, %v1214_v36 }
 0x43e   :  { %v1195_v45 = vpop.xlane.xlu1 %1194  ;;  %v1198_v48 = vpop.xlane.xlu0 %1197 }
 0x43f   :  { %2924 = vpow2.f32 %v1230_v42  ;;  %v1215_v40 = vsub.f32 %v3317_v1, %v1195_v45  ;;  %v1216_v49 = vsub.f32 %v3321_v2, %v1198_v48 }
 0x440   :  { %v3378_v50 = vpop.eup %2918  ;;  %2926 = vpow2.f32 %v1232_v43 }
 0x441   :  { %v1234_v44 = vmul.f32 1.442695, %v1215_v40  ;;  %v1236_v53 = vmul.f32 1.442695, %v1216_v49  ;;  %v1250_v54 = vsel %vm242_vm3, %v3378_v50, 0.0 }
 0x442   :  { %v1201_v51 = vpop.xlane.xlu1 %1200  ;;  %1251 = vadd.xlane.f32.xlu0 %v1250_v54 }
 0x443   :  { %2928 = vpow2.f32 %v1234_v44  ;;  %v1217_v52 = vsub.f32 %v3329_v8, %v1201_v51  ;;  %v1204_v55 = vpop.xlane.xlu0 %1203 }
 0x444   :  { %v3383_v59 = vpop.eup %2920  ;;  %2930 = vpow2.f32 %v1236_v53  ;;  %v1218_v61 = vsub.f32 %v3333_v10, %v1204_v55 }
 0x445   :  { %v1238_v0 = vmul.f32 1.442695, %v1217_v52  ;;  %v1253_v1 = vsel %vm242_vm3, %v3383_v59, 0.0 }
 0x446   :  { %v1240_v2 = vmul.f32 1.442695, %v1218_v61  ;;  %v1207_v3 = vpop.xlane.xlu1 %1206  ;;  %1254 = vadd.xlane.f32.xlu0 %v1253_v1 }
 0x447   :  { %2932 = vpow2.f32 %v1238_v0  ;;  %v1219_v4 = vsub.f32 %v3341_v16, %v1207_v3  ;;  %v1609_v58 = vpop.permute.xlu0 %1608 }
 0x448   :  { %v3389_v5 = vpop.eup %2922  ;;  %2934 = vpow2.f32 %v1240_v2 }
 0x449   :  { %v1242_v6 = vmul.f32 1.442695, %v1219_v4  ;;  %v1256_v7 = vsel %vm242_vm3, %v3389_v5, 0.0 }
 0x44a   :  { %1257 = vadd.xlane.f32.xlu0 %v1256_v7  ;;  %v1533_v26 = vpop.permute.xlu1 %1532 }
 0x44b   :  { %2936 = vpow2.f32 %v1242_v6  ;;  %v1761_v60 = vpop.permute.xlu0 %1760 }
 0x44c   :  { %v3393_v8 = vpop.eup %2924 }
 0x44d   :  { %v3395_v9 = vpop.eup %2926  ;;  %v1259_v10 = vsel %vm242_vm3, %v3393_v8, 0.0 }
 0x44e   :  { %1260 = vadd.xlane.f32.xlu1 %v1259_v10  ;;  %v1262_v11 = vsel %vm242_vm3, %v3395_v9, 0.0  ;;  %v1685_v63 = vpop.permute.xlu1 %1684 }
 0x44f   :  { %1263 = vadd.xlane.f32.xlu0 %v1262_v11  ;;  %v3425_v20 = vpop.permute.xlu0 %1912 }
 0x450   :  { %v3401_v12 = vpop.eup %2928 }
 0x451   :  { %v3403_v13 = vpop.eup %2930  ;;  %v1265_v14 = vsel %vm242_vm3, %v3401_v12, 0.0 }
 0x452   :  { %1266 = vadd.xlane.f32.xlu1 %v1265_v14  ;;  %v1268_v15 = vsel %vm242_vm3, %v3403_v13, 0.0  ;;  %v3427_v27 = vpop.permute.xlu1 %1836  ;;  %v2274_v14 = vld [vmem:[%s3725_s5 + $0x20] sm:$0xff] }
 0x453   :  { %1269 = vadd.xlane.f32.xlu0 %v1268_v15 }
 0x454   :  { %v3409_v16 = vpop.eup %2932 }
 0x455   :  { %v3411_v18 = vpop.eup %2934  ;;  %v1271_v21 = vsel %vm242_vm3, %v3409_v16, 0.0 }
 0x456   :  { %1272 = vadd.xlane.f32.xlu1 %v1271_v21  ;;  %v1274_v24 = vsel %vm242_vm3, %v3411_v18, 0.0  ;;  %v3429_v29 = vpop.permute.xlu1 %1988  ;;  %v2272_v21 = vld [vmem:[%s3725_s5 + $0x10] sm:$0xff] }
 0x457   :  { %1275 = vadd.xlane.f32.xlu0 %v1274_v24 }
 0x458   :  { %v3417_v56 = vpop.eup %2936 }
 0x459   :  { %v1277_v25 = vsel %vm242_vm3, %v3417_v56, 0.0 }
 0x45a   :  { %1278 = vadd.xlane.f32.xlu1 %v1277_v25 }
 0x46b   :  { %2140 = vrot.lane.b32.xlu1 %v3262_v23, %s2976_s14 }
 0x46d   :  { %2064 = vrot.lane.b32.xlu0 %v3260_v22, %s2976_s14 }
 0x480   :  { %v1246_v28 = vpop.xlane.xlu0 %1245 }
 0x481   :  { %2938 = vrcp.f32 %v1246_v28 }
 0x487   :  { %v1249_v30 = vpop.xlane.xlu1 %1248 }
 0x488   :  { %2940 = vrcp.f32 %v1249_v30 }
 0x48e   :  { %v2939_v31 = vpop.eup %2938 }
 0x48f   :  { %v1281_v23 = vmul.f32 %v2939_v31, %v3361_v57 }
 0x491   :  { %2825 = vmatmul.mubr.msk.f32.vlgmr.msra.gmra.mxu1 %vm242_vm3, %v1281_v23 }
 0x492   :  { %2833 = vmatpush3.msra.mxu1 %v3371_v33  ;;  %2834 = vmatprep.mubr.msk.f32.mxu1 %vm2971_vm2, %v2968_v17 }
 0x493   :  { %2842 = vmatprep.subr.mxu1 %v2968_v17 }
 0x495   :  { %v2941_v22 = vpop.eup %2940 }
 0x496   :  { %v1283_v32 = vmul.f32 %v2941_v22, %v3365_v19 }
 0x498   :  { %2830 = vmatmul.mubr.msk.f32.vlgmr.msra.gmra.mxu0 %vm242_vm3, %v1283_v32 }
 0x499   :  { %2838 = vmatpush3.msra.mxu0 %v1533_v26  ;;  %2839 = vmatprep.mubr.msk.f32.mxu0 %vm2971_vm2, %v2968_v17 }
 0x49a   :  { %2847 = vmatprep.subr.mxu0 %v2968_v17 }
 0x4cb   :  { %v1252_v57 = vpop.xlane.xlu0 %1251 }
 0x4cc   :  { %2942 = vrcp.f32 %v1252_v57 }
 0x4cf   :  { %v1255_v34 = vpop.xlane.xlu0 %1254 }
 0x4d0   :  { %2944 = vrcp.f32 %v1255_v34 }
 0x4d3   :  { %v1258_v33 = vpop.xlane.xlu0 %1257 }
 0x4d4   :  { %2946 = vrcp.f32 %v1258_v33 }
 0x4d7   :  { %v1261_v35 = vpop.xlane.xlu1 %1260 }
 0x4d8   :  { %2948 = vrcp.f32 %v1261_v35  ;;  %v1264_v37 = vpop.xlane.xlu0 %1263 }
 0x4d9   :  { %v2943_v38 = vpop.eup %2942  ;;  %2950 = vrcp.f32 %v1264_v37 }
 0x4da   :  { %v1285_v19 = vmul.f32 %v2943_v38, %v3378_v50 }
 0x4db   :  { %v1267_v39 = vpop.xlane.xlu1 %1266 }
 0x4dc   :  { %2952 = vrcp.f32 %v1267_v39  ;;  %v1270_v41 = vpop.xlane.xlu0 %1269  ;;  %2835 = vmatmul.mubr.msk.f32.vlgmr.msra.gmra.mxu1 %vm242_vm3, %v1285_v19 }
 0x4dd   :  { %v2945_v36 = vpop.eup %2944  ;;  %2954 = vrcp.f32 %v1270_v41  ;;  %2843 = vmatpush3.msra.mxu1 %v1609_v58  ;;  %2844 = vmatprep.mubr.msk.f32.mxu1 %vm2971_vm2, %v2968_v17  ;;  %v2270_v58 = vld [vmem:[%s3725_s5] sm:$0xff] }
 0x4de   :  { %v1287_v42 = vmul.f32 %v2945_v36, %v3383_v59  ;;  %2852 = vmatprep.subr.mxu1 %v2968_v17 }
 0x4df   :  { %v1273_v43 = vpop.xlane.xlu1 %1272 }
 0x4e0   :  { %2956 = vrcp.f32 %v1273_v43  ;;  %v1276_v45 = vpop.xlane.xlu0 %1275  ;;  %2840 = vmatmul.mubr.msk.f32.vlgmr.msra.gmra.mxu0 %vm242_vm3, %v1287_v42 }
 0x4e1   :  { %v2947_v48 = vpop.eup %2946  ;;  %2958 = vrcp.f32 %v1276_v45  ;;  %2848 = vmatpush3.msra.mxu0 %v1685_v63  ;;  %2849 = vmatprep.mubr.msk.f32.mxu0 %vm2971_vm2, %v2968_v17 }
 0x4e2   :  { %v1289_v40 = vmul.f32 %v2947_v48, %v3389_v5  ;;  %2857 = vmatprep.subr.mxu0 %v2968_v17 }
 0x4e3   :  { %v1279_v49 = vpop.xlane.xlu1 %1278 }
 0x4e4   :  { %2960 = vrcp.f32 %v1279_v49  ;;  %2845 = vmatmul.mubr.msk.f32.vlgmr.msra.gmra.mxu1 %vm242_vm3, %v1289_v40  ;;  %v2065_v0 = vpop.permute.xlu0 %2064 }
 0x4e5   :  { %v2949_v50 = vpop.eup %2948  ;;  %2853 = vmatpush3.msra.mxu1 %v1761_v60  ;;  %2854 = vmatprep.mubr.msk.f32.mxu1 %vm2971_vm2, %v2968_v17 }
 0x4e6   :  { %v2951_v44 = vpop.eup %2950  ;;  %2862 = vmatprep.subr.mxu1 %v2968_v17  ;;  %v1291_v53 = vmul.f32 %v2949_v50, %v3393_v8 }
 0x4e7   :  { %v1293_v54 = vmul.f32 %v2951_v44, %v3395_v9  ;;  %v2141_v4 = vpop.permute.xlu1 %2140 }
 0x4e8   :  { %2850 = vmatmul.mubr.msk.f32.vlgmr.msra.gmra.mxu0 %vm242_vm3, %v1291_v53 }
 0x4e9   :  { %v2953_v51 = vpop.eup %2952  ;;  %2855 = vmatmul.mubr.msk.f32.vlgmr.msra.gmra.mxu1 %vm242_vm3, %v1293_v54  ;;  %2858 = vmatpush3.msra.mxu0 %v3427_v27 }
 0x4ea   :  { %v2955_v52 = vpop.eup %2954  ;;  %2863 = vmatpush3.msra.mxu1 %v3425_v20  ;;  %2859 = vmatprep.mubr.msk.f32.mxu0 %vm2971_vm2, %v2968_v17  ;;  %v1295_v55 = vmul.f32 %v2953_v51, %v3401_v12 }
 0x4eb   :  { %2864 = vmatprep.mubr.msk.f32.mxu1 %vm2971_vm2, %v2968_v17  ;;  %2867 = vmatprep.subr.mxu0 %v2968_v17  ;;  %v1297_v59 = vmul.f32 %v2955_v52, %v3403_v13  ;;  %v2275_v13 = vld [vmem:[%s3725_s5 + $0x28] sm:$0xff] }
 0x4ec   :  { %2872 = vmatprep.subr.mxu1 %v2968_v17  ;;  %2860 = vmatmul.mubr.msk.f32.vlgmr.msra.gmra.mxu0 %vm242_vm3, %v1295_v55  ;;  %v2694_v55 = vld [vmem:[%s3726_s6] ss:$0 sm:$0xff] }
 0x4ed   :  { %v2957_v61 = vpop.eup %2956  ;;  %2865 = vmatmul.mubr.msk.f32.vlgmr.msra.gmra.mxu1 %vm242_vm3, %v1297_v59  ;;  %2868 = vmatpush3.msra.mxu0 %v3429_v29 }
 0x4ee   :  { %v2959_v1 = vpop.eup %2958  ;;  %2873 = vmatpush3.msra.mxu1 %v2065_v0  ;;  %2869 = vmatprep.mubr.msk.f32.mxu0 %vm2971_vm2, %v2968_v17  ;;  %v1299_v2 = vmul.f32 %v2957_v61, %v3409_v16  ;;  %v2273_v16 = vld [vmem:[%s3725_s5 + $0x18] sm:$0xff] }
 0x4ef   :  { %2874 = vmatprep.mubr.msk.f32.mxu1 %vm2971_vm2, %v2968_v17  ;;  %2877 = vmatprep.subr.mxu0 %v2968_v17  ;;  %v1301_v3 = vmul.f32 %v2959_v1, %v3411_v18  ;;  %v2966_v1 = vld [vmem:[%s3720_s0 + $0x8] sm:$0xff] }
 0x4f0   :  { %2870 = vmatmul.mubr.msk.f32.vlgmr.msra.gmra.mxu0 %vm242_vm3, %v1299_v2  ;;  %2569 = vmatprep.subr.mxu1 %v2968_v17 }
 0x4f1   :  { %v2961_v5 = vpop.eup %2960  ;;  %2875 = vmatmul.mubr.msk.f32.vlgmr.msra.gmra.mxu1 %vm242_vm3, %v1301_v3  ;;  %2878 = vmatpush3.msra.mxu0 %v2141_v4  ;;  %v2967_v4 = vld [vmem:[%s3720_s0] sm:$0xff] }
 0x4f2   :  { %2879 = vmatprep.mubr.msk.f32.mxu0 %vm2971_vm2, %v2968_v17  ;;  %v1303_v6 = vmul.f32 %v2961_v5, %v3417_v56  ;;  %2882 = vmatprep.subr.mxu0 %v2275_v13  ;;  %v2271_v56 = vld [vmem:[%s3725_s5 + $0x8] sm:$0xff]  ;;  %s2980_s5 = smov 40  }
 0x4f4   :  { %2880 = vmatmul.mubr.msk.f32.vlgmr.msra.gmra.mxu0 %vm242_vm3, %v1303_v6 }
 0x4f5   :  { %2883 = vmatpush3.msra.mxu0 %v2275_v13 }
 0x4f6   :  { %2884 = vmatprep.subr.mxu0 %v2274_v14 }
 0x4f7   :  { %2885 = vmatpush3.msra.mxu0 %v2274_v14 }
 0x4f8   :  { %2886 = vmatprep.subr.mxu0 %v2273_v16 }
 0x4f9   :  { %2887 = vmatpush3.msra.mxu0 %v2273_v16 }
 0x4fa   :  { %2888 = vmatprep.subr.mxu0 %v2272_v21 }
 0x4fb   :  { %2889 = vmatpush3.msra.mxu0 %v2272_v21  ;;  %v2424_v21 = vld [vmem:[%s3727_s9 + $0x68] sm:$0x3] }
 0x4fc   :  { %2890 = vmatprep.subr.mxu0 %v2271_v56 }
 0x4fd   :  { %2891 = vmatpush3.msra.mxu0 %v2271_v56  ;;  %v2422_v56 = vld [vmem:[%s3727_s9 + $0x58] sm:$0xff] }
 0x4fe   :  { %2892 = vmatprep.subr.mxu0 %v2270_v58 }
 0x4ff   :  { %2893 = vmatpush3.msra.mxu0 %v2270_v58  ;;  %v2420_v58 = vld [vmem:[%s3727_s9 + $0x48] sm:$0xff] }
 0x500   :  { %2699 = vmatprep.subr.msk.mxu0 %vm124_vm1, %v2424_v21 }
 0x551   :  { %v3488_v7 = vpop.f32.mrf.mxu1 }
 0x553   :  { %v2826_v8 = vpop.f32.mrf.mxu1 }
 0x558   :  { %v3490_v9 = vpop.f32.mrf.mxu0 }
 0x55a   :  { %v2831_v10 = vpop.f32.mrf.mxu0 }
 0x59c   :  { %v1528_v11 = vpop.f32.mrf.mxu1 }
 0x59d   :  { %2218 = vrot.lane.b32.xlu0 %v1528_v11, %s2977_s15 }
 0x59e   :  { %v2836_v12 = vpop.f32.mrf.mxu1 }
 0x5a0   :  { %v1604_v15 = vpop.f32.mrf.mxu0 }
 0x5a1   :  { %2220 = vrot.lane.b32.xlu1 %v1604_v15, %s2977_s15 }
 0x5a2   :  { %v2841_v18 = vpop.f32.mrf.mxu0 }
 0x5a4   :  { %v1680_v24 = vpop.f32.mrf.mxu1 }
 0x5a5   :  { %2226 = vrot.lane.b32.xlu0 %v1680_v24, %s2978_s24  ;;  %v2423_v24 = vld [vmem:[%s3727_s9 + $0x60] sm:$0x3] }
 0x5a6   :  { %v2846_v25 = vpop.f32.mrf.mxu1 }
 0x5a7   :  { %v2421_v25 = vld [vmem:[%s3727_s9 + $0x50] sm:$0xff] }
 0x5a8   :  { %v1756_v26 = vpop.f32.mrf.mxu0 }
 0x5a9   :  { %v1832_v60 = vpop.f32.mrf.mxu1  ;;  %2228 = vrot.lane.b32.xlu1 %v1756_v26, %s2978_s24  ;;  %v2419_v26 = vld [vmem:[%s3727_s9 + $0x40] sm:$0xff] }
 0x5aa   :  { %2234 = vrot.lane.b32.xlu0 %v1832_v60, %s2979_s26  ;;  %v2851_v63 = vpop.f32.mrf.mxu0  ;;  %v2418_v60 = vld [vmem:[%s3727_s9 + $0x38] sm:$0xff] }
 0x5ab   :  { %v2856_v20 = vpop.f32.mrf.mxu1  ;;  %v2417_v63 = vld [vmem:[%s3727_s9 + $0x30] sm:$0xff] }
 0x5ac   :  { %v1908_v27 = vpop.f32.mrf.mxu0  ;;  %v2416_v20 = vld [vmem:[%s3727_s9 + $0x28] sm:$0xff] }
 0x5ad   :  { %v1984_v28 = vpop.f32.mrf.mxu1  ;;  %2236 = vrot.lane.b32.xlu1 %v1908_v27, %s2979_s26  ;;  %v2415_v27 = vld [vmem:[%s3727_s9 + $0x20] sm:$0xff] }
 0x5ae   :  { %2242 = vrot.lane.b32.xlu0 %v1984_v28, %s2976_s14  ;;  %v2861_v29 = vpop.f32.mrf.mxu0  ;;  %v2414_v28 = vld [vmem:[%s3727_s9 + $0x18] sm:$0xff] }
 0x5af   :  { %v2866_v30 = vpop.f32.mrf.mxu1  ;;  %v2413_v29 = vld [vmem:[%s3727_s9 + $0x10] sm:$0xff] }
 0x5b0   :  { %v2060_v31 = vpop.f32.mrf.mxu0  ;;  %v2412_v30 = vld [vmem:[%s3727_s9 + $0x8] sm:$0xff] }
 0x5b1   :  { %v2136_v23 = vpop.f32.mrf.mxu1  ;;  %2244 = vrot.lane.b32.xlu1 %v2060_v31, %s2976_s14  ;;  %v2411_v31 = vld [vmem:[%s3727_s9] sm:$0xff] }
 0x5b2   :  { %2250 = vrot.lane.b32.xlu0 %v2136_v23, %s2980_s5  ;;  %v2871_v22 = vpop.f32.mrf.mxu0  ;;  %v2545_v23 = vld [vmem:[%s3728_s11 + $0x78] sm:$0xff] }
 0x5b3   :  { %v2876_v32 = vpop.f32.mrf.mxu1  ;;  %v2544_v22 = vld [vmem:[%s3728_s11 + $0x70] sm:$0xff]  ;;  %2570 = vmatpush1.msra.mxu1 %v2545_v23 }
 0x5b4   :  { %v2212_v57 = vpop.f32.mrf.mxu0  ;;  %2571 = vmatprep.subr.mxu1 %v2968_v17  ;;  %v2543_v32 = vld [vmem:[%s3728_s11 + $0x68] sm:$0xff] }
 0x5b5   :  { %2252 = vrot.lane.b32.xlu1 %v2212_v57, %s2980_s5  ;;  %2572 = vmatpush1.msra.mxu1 %v2544_v22  ;;  %v2542_v57 = vld [vmem:[%s3728_s11 + $0x60] sm:$0xff] }
 0x5b6   :  { %v2881_v34 = vpop.f32.mrf.mxu0  ;;  %2573 = vmatprep.subr.mxu1 %v2968_v17 }
 0x5b7   :  { %2574 = vmatpush1.msra.mxu1 %v2543_v32  ;;  %v2541_v34 = vld [vmem:[%s3728_s11 + $0x58] sm:$0xff] }
 0x5b8   :  { %2575 = vmatprep.subr.mxu1 %v2968_v17 }
 0x5b9   :  { %2576 = vmatpush1.msra.mxu1 %v2542_v57 }
 0x5ba   :  { %2577 = vmatprep.subr.mxu1 %v2968_v17 }
 0x5bb   :  { %2578 = vmatpush1.msra.mxu1 %v2541_v34 }
 0x5bc   :  { %2579 = vmatprep.subr.mxu1 %v2968_v17 }
 0x60f   :  { %v2219_v33 = vpop.permute.xlu0 %2218 }
 0x610   :  { %v2256_v36 = vsel %vm242_vm3, %v3488_v7, %v2219_v33  ;;  %v2540_v33 = vld [vmem:[%s3728_s11 + $0x50] sm:$0xff] }
 0x611   :  { %2580 = vmatpush1.msra.mxu1 %v2540_v33 }
 0x612   :  { %2581 = vmatprep.subr.mxu1 %v2968_v17 }
 0x613   :  { %v2221_v35 = vpop.permute.xlu1 %2220 }
 0x614   :  { %v2257_v48 = vsel %vm242_vm3, %v3490_v9, %v2221_v35  ;;  %v2539_v35 = vld [vmem:[%s3728_s11 + $0x48] sm:$0xff] }
 0x615   :  { %2582 = vmatpush1.msra.mxu1 %v2539_v35 }
 0x616   :  { %2583 = vmatprep.subr.mxu1 %v2968_v17 }
 0x617   :  { %v2227_v37 = vpop.permute.xlu0 %2226 }
 0x618   :  { %v2259_v42 = vsel %vm2258_vm5, %v2256_v36, %v2227_v37  ;;  %v2538_v37 = vld [vmem:[%s3728_s11 + $0x40] sm:$0xff]  ;;  %v2533_v36 = vld [vmem:[%s3728_s11 + $0x18] sm:$0xff] }
 0x619   :  { %2584 = vmatpush1.msra.mxu1 %v2538_v37 }
 0x61a   :  { %2585 = vmatprep.subr.mxu1 %v2968_v17 }
 0x61b   :  { %v2229_v38 = vpop.permute.xlu1 %2228 }
 0x61c   :  { %v2235_v19 = vpop.permute.xlu0 %2234  ;;  %v2260_v50 = vsel %vm2258_vm5, %v2257_v48, %v2229_v38  ;;  %v2537_v38 = vld [vmem:[%s3728_s11 + $0x38] sm:$0xff]  ;;  %v2554_v48 = vld [vmem:[%s3728_s11 + $0xc0] sm:$0xff] }
 0x61d   :  { %v2262_v43 = vsel %vm2261_vm6, %v2259_v42, %v2235_v19  ;;  %v2536_v19 = vld [vmem:[%s3728_s11 + $0x30] sm:$0xff]  ;;  %2586 = vmatpush1.msra.mxu1 %v2537_v38 }
 0x61e   :  { %2587 = vmatprep.subr.mxu1 %v2968_v17  ;;  %v2532_v42 = vld [vmem:[%s3728_s11 + $0x10] sm:$0xff] }
 0x61f   :  { %v2237_v39 = vpop.permute.xlu1 %2236  ;;  %2588 = vmatpush1.msra.mxu1 %v2536_v19 }
 0x620   :  { %v2243_v41 = vpop.permute.xlu0 %2242  ;;  %v2263_v53 = vsel %vm2261_vm6, %v2260_v50, %v2237_v39  ;;  %v2535_v39 = vld [vmem:[%s3728_s11 + $0x28] sm:$0xff]  ;;  %2589 = vmatprep.subr.mxu1 %v2968_v17 }
 0x621   :  { %v2265_v40 = vsel %vm2264_vm7, %v2262_v43, %v2243_v41  ;;  %v2534_v41 = vld [vmem:[%s3728_s11 + $0x20] sm:$0xff]  ;;  %2590 = vmatpush1.msra.mxu1 %v2535_v39  ;;  %v2531_v43 = vld [vmem:[%s3728_s11 + $0x8] sm:$0xff] }
 0x622   :  { %2591 = vmatprep.subr.mxu1 %v2968_v17  ;;  %v2551_v50 = vld [vmem:[%s3728_s11 + $0xa8] sm:$0xff] }
 0x623   :  { %v2245_v45 = vpop.permute.xlu1 %2244  ;;  %2592 = vmatpush1.msra.mxu1 %v2534_v41 }
 0x624   :  { %v2251_v49 = vpop.permute.xlu0 %2250  ;;  %v2266_v54 = vsel %vm2264_vm7, %v2263_v53, %v2245_v45  ;;  %2593 = vmatprep.subr.mxu1 %v2968_v17  ;;  %v2530_v45 = vld [vmem:[%s3728_s11] sm:$0xff] }
 0x625   :  { %v2268_v44 = vsel %vm2267_vm8, %v2265_v40, %v2251_v49  ;;  %2594 = vmatpush1.msra.mxu1 %v2533_v36  ;;  %v2553_v40 = vld [vmem:[%s3728_s11 + $0xb8] sm:$0xff]  ;;  %v2552_v49 = vld [vmem:[%s3728_s11 + $0xb0] sm:$0xff] }
 0x626   :  { %2894 = vmatprep.mubr.msk.f32.mxu0 %vm2283_vm9, %v2268_v44  ;;  %2595 = vmatprep.subr.mxu1 %v2968_v17  ;;  %v2550_v44 = vld [vmem:[%s3728_s11 + $0xa0] sm:$0xff] }
 0x627   :  { %v2253_v51 = vpop.permute.xlu1 %2252  ;;  %2596 = vmatpush1.msra.mxu1 %v2532_v42 }
 0x628   :  { %v2269_v52 = vsel %vm2267_vm8, %v2266_v54, %v2253_v51  ;;  %2597 = vmatprep.subr.mxu1 %v2968_v17 }
 0x629   :  { %2895 = vmatmul.mubr.msk.f32.vlgmr.msra.gmra.mxu0 %vm2283_vm9, %v2269_v52  ;;  %2598 = vmatpush1.msra.mxu1 %v2531_v43 }
 0x62a   :  { %2513 = vmatprep.mubr.f32.mxu0 %v2968_v17  ;;  %2700 = vmatpush1.msk.msra.mxu0 %vm124_vm1, %v2423_v24 }
 0x62b   :  { %2469 = vmatprep.subr.mxu0 %v2422_v56  ;;  %2599 = vmatprep.subr.mxu1 %v2968_v17 }
 0x62c   :  { %2470 = vmatpush1.msra.mxu0 %v2421_v25  ;;  %2600 = vmatpush1.msra.mxu1 %v2530_v45 }
 0x62d   :  { %2471 = vmatprep.subr.mxu0 %v2420_v58  ;;  %2615 = vmatprep.subr.mxu1 %v2968_v17 }
 0x62e   :  { %2472 = vmatpush1.msra.mxu0 %v2419_v26  ;;  %2616 = vmatpush2.msra.mxu1 %v2554_v48 }
 0x62f   :  { %2473 = vmatprep.subr.mxu0 %v2418_v60  ;;  %2617 = vmatprep.subr.mxu1 %v2968_v17 }
 0x630   :  { %2474 = vmatpush1.msra.mxu0 %v2417_v63  ;;  %2618 = vmatpush2.msra.mxu1 %v2553_v40 }
 0x631   :  { %2475 = vmatprep.subr.mxu0 %v2416_v20  ;;  %2619 = vmatprep.subr.mxu1 %v2968_v17 }
 0x632   :  { %2476 = vmatpush1.msra.mxu0 %v2415_v27  ;;  %2620 = vmatpush2.msra.mxu1 %v2552_v49 }
 0x633   :  { %2477 = vmatprep.subr.mxu0 %v2414_v28  ;;  %2621 = vmatprep.subr.mxu1 %v2968_v17 }
 0x634   :  { %2478 = vmatpush1.msra.mxu0 %v2413_v29  ;;  %2622 = vmatpush2.msra.mxu1 %v2551_v50 }
 0x635   :  { %2479 = vmatprep.subr.mxu0 %v2412_v30  ;;  %2623 = vmatprep.subr.mxu1 %v2968_v17 }
 0x636   :  { %2480 = vmatpush1.msra.mxu0 %v2411_v31  ;;  %2624 = vmatpush2.msra.mxu1 %v2550_v44 }
 0x637   :  { %2625 = vmatprep.subr.mxu1 %v2968_v17 }
 0x6e9   :  { %v2896_v59 = vpop.f32.mrf.mxu0 }
 0x6ea   :  { %v2362_v61 = vadd.f32 %v2896_v59, %v2694_v55 }
 0x6eb   :  { %v2356_v0 = vpop.f32.mrf.mxu0 }
 0x6ec   :  { %v3523_v2 = vadd.f32 %v2966_v1, %v2362_v61  ;;  %v2357_v3 = vadd.f32 %v2694_v55, %v2356_v0  ;;  %v2697_v0 = vld [vmem:[%s3729_s7] ss:$0 sm:$0xff] }
 0x6ee   :  { %v3528_v5 = vadd.f32 %v2967_v4, %v2357_v3  ;;  %v2372_v6 = vsel %vm48_vm0, %v3523_v2, 0.0  ;;  %v2698_v3 = vld [vmem:[%s3730_s8] ss:$0 sm:$0xff] }
 0x6ef   :  { %2373 = vadd.xlane.f32.xlu1 %v2372_v6 }
 0x6f0   :  { %v2369_v7 = vsel %vm48_vm0, %v3528_v5, 0.0 }
 0x6f1   :  { %2370 = vadd.xlane.f32.xlu0 %v2369_v7 }
 0x778   :  { %v2374_v8 = vpop.xlane.xlu1 %2373 }
 0x779   :  { %v2376_v9 = vmul.f32 0.02, %v2374_v8 }
 0x77a   :  { %v2371_v10 = vpop.xlane.xlu0 %2370 }
 0x77b   :  { %v2375_v11 = vmul.f32 0.02, %v2371_v10  ;;  %v3535_v12 = vsub.f32 %v3523_v2, %v2376_v9 }
 0x77d   :  { %v3538_v13 = vsub.f32 %v3528_v5, %v2375_v11  ;;  %v2380_v16 = vmul.f32 %v3535_v12, %v3535_v12  ;;  %v2549_v11 = vld [vmem:[%s3728_s11 + $0x98] sm:$0xff] }
 0x77e   :  { %2626 = vmatpush2.msra.mxu1 %v2549_v11 }
 0x77f   :  { %v2379_v14 = vmul.f32 %v3538_v13, %v3538_v13  ;;  %v2384_v18 = vsel %vm48_vm0, %v2380_v16, 0.0  ;;  %2627 = vmatprep.subr.mxu1 %v2968_v17 }
 0x781   :  { %v2381_v15 = vsel %vm48_vm0, %v2379_v14, 0.0  ;;  %v2546_v14 = vld [vmem:[%s3728_s11 + $0x80] sm:$0xff] }
 0x782   :  { %2382 = vadd.xlane.f32.xlu0 %v2381_v15  ;;  %v2425_v15 = vld [vmem:[%s3731_s10] sm:$0x3] }
 0x783   :  { %v2430_v16 = vrot.slane %v2425_v15, %v110_v47 }
 0x786   :  { %2385 = vadd.xlane.f32.xlu0 %v2384_v18  ;;  %v2434_v18 = vrot.slane %v2425_v15, %v114_v62 }
 0x80b   :  { %v2383_v53 = vpop.xlane.xlu0 %2382 }
 0x80c   :  { %v2387_v54 = vmul.f32 0.02, %v2383_v53 }
 0x80e   :  { %v2389_v51 = vadd.f32 1e-05, %v2387_v54 }
 0x80f   :  { %v2386_v52 = vpop.xlane.xlu0 %2385 }
 0x810   :  { %2962 = vrsqrt.f32 %v2389_v51  ;;  %v2388_v55 = vmul.f32 0.02, %v2386_v52 }
 0x812   :  { %v2390_v59 = vadd.f32 1e-05, %v2388_v55 }
 0x814   :  { %2964 = vrsqrt.f32 %v2390_v59 }
 0x81d   :  { %v2963_v61 = vpop.eup %2962 }
 0x81e   :  { %v2393_v1 = vmul.f32 %v2963_v61, %v3538_v13  ;;  %v2548_v13 = vld [vmem:[%s3728_s11 + $0x90] sm:$0xff] }
 0x81f   :  { %2628 = vmatpush2.msra.mxu1 %v2548_v13 }
 0x820   :  { %v2401_v4 = vmul.f32 %v2697_v0, %v2393_v1  ;;  %2629 = vmatprep.subr.mxu1 %v2968_v17 }
 0x821   :  { %v2965_v6 = vpop.eup %2964 }
 0x822   :  { %v2409_v7 = vadd.f32 %v2698_v3, %v2401_v4  ;;  %v2394_v8 = vmul.f32 %v2965_v6, %v3535_v12  ;;  %v2547_v12 = vld [vmem:[%s3728_s11 + $0x88] sm:$0xff] }
 0x823   :  { %2630 = vmatpush2.msra.mxu1 %v2547_v12 }
 0x824   :  { %2701 = vmatmul.mubr.msk.f32.vlgmr.msra.gmra.mxu0 %vm48_vm0, %v2409_v7  ;;  %v2402_v9 = vmul.f32 %v2697_v0, %v2394_v8  ;;  %2631 = vmatprep.subr.mxu1 %v2968_v17 }
 0x825   :  { %2519 = vmatprep.mubr.f32.mxu0 %v2968_v17  ;;  %2632 = vmatpush2.msra.mxu1 %v2546_v14 }
 0x826   :  { %v2410_v10 = vadd.f32 %v2698_v3, %v2402_v9 }
 0x828   :  { %2702 = vmatmul.mubr.msk.f32.gmra.mxu0 %vm48_vm0, %v2410_v10 }
 0x8e4   :  { %v2515_v21 = vpop.f32.mrf.mxu0 }
 0x8e5   :  { %v2516_v24 = vadd.f32 %v2515_v21, %v2430_v16 }
 0x8e6   :  { %v2517_v56 = vpop.f32.mrf.mxu0 }
 0x8e7   :  { %v2518_v25 = vadd.f32 %v2517_v56, %v2434_v18  ;;  %v2526_v26 = vmax.f32 %v2516_v24, 0.0 }
 0x8e8   :  { %v2521_v17 = vpop.f32.mrf.mxu0 }
 0x8e9   :  { %v2527_v58 = vmax.f32 %v2518_v25, 0.0  ;;  %v2522_v60 = vadd.f32 %v2521_v17, %v2430_v16 }
 0x8ea   :  { %v2523_v63 = vpop.f32.mrf.mxu0 }
 0x8eb   :  { %v2524_v20 = vadd.f32 %v2523_v63, %v2434_v18  ;;  %2704 = vmatprep.mubr.msk.f32.mxu1 %vm2562_vm10, %v2527_v58  ;;  %v2528_v28 = vmax.f32 %v2522_v60, 0.0 }
 0x8ec   :  { %2634 = vmatmul.mubr.f32.vlgmr.msra.gmra.mxu1 %v2526_v26 }
 0x8ed   :  { %v2529_v27 = vmax.f32 %v2524_v20, 0.0 }
 0x8ef   :  { %2705 = vmatprep.mubr.msk.f32.mxu1 %vm2562_vm10, %v2529_v27 }
 0x8f0   :  { %2639 = vmatmul.mubr.f32.gmra.mxu1 %v2528_v28 }
 0x9ac   :  { %v2635_v47 = vpop.f32.mrf.mxu1 }
 0x9ad   :  { %v2636_v62 = vadd.f32 %v2703_v46, %v2635_v47 }
 0x9ae   :  { %v2637_v29 = vpop.f32.mrf.mxu1 }
 0x9af   :  { %v2644_v30 = vadd.f32 %v2636_v62, %v3528_v5 }
 0x9b0   :  { %v2640_v31 = vpop.f32.mrf.mxu1 }
 0x9b1   :  { %2646 = vst.msk [vmem:[%s3733_s13] sm:$0xff] %vm48_vm0, %v2644_v30  ;;  %v2641_v23 = vadd.f32 %v2703_v46, %v2640_v31 }
 0x9b2   :  { %v2642_v22 = vpop.f32.mrf.mxu1 }
 0x9b3   :  { %v2645_v32 = vadd.f32 %v2641_v23, %v3523_v2 }
 0x9b5   :  { %2647 = vst.msk [vmem:[%s3733_s13 + $0x8] sm:$0xff] %vm48_vm0, %v2645_v32 }

</bundles_post_ra>
